<compile_context>
chip_gen: v5e
topology: v5e:2x2
jax: 0.10.0
libtpu: 0.0.40
codegen_flags: <defaults>
</compile_context>

<pallas_src>
import functools

import jax
import jax.numpy as jnp
from jax import lax
from jax.experimental import pallas as pl
from jax.experimental.pallas import tpu as pltpu

LANE = 128      # lane-dense channel / hidden width for kernel outputs
KH = KW = 5     # LeNet conv kernel size


def _round_up(x, m):
    return (x + m - 1) // m * m


# ---------------------------------------------------------------------------
# Pallas kernels
# ---------------------------------------------------------------------------
def _conv_relu_pool_kernel(x_ref, w_ref, b_ref, o_ref):
    """Fused conv (im2col matmul) + bias + ReLU + 2x2 max-pool, one batch tile.

    x_ref: (1, 4, B*P, K)  quadrant-ordered im2col patches (B images per tile)
    w_ref: (K, 128)        conv weights, output channels zero-padded to 128
    b_ref: (1, 128)
    o_ref: (1, B*P, 128)   pooled output, P = (Ho//2) * (Wo//2)
    """
    w = w_ref[...]
    acc = jnp.dot(x_ref[0, 0], w, preferred_element_type=jnp.float32)
    for q in range(1, 4):                    # the remaining 2x2 pooling phases
        acc = jnp.maximum(
            acc, jnp.dot(x_ref[0, q], w, preferred_element_type=jnp.float32))
    # bias + ReLU hoisted out of the quadrant loop (exact).
    o_ref[0] = jnp.maximum(acc + b_ref[...], 0.0).astype(o_ref.dtype)


def conv_relu_pool(patches, w, b):
    """patches: (G, 4, B*P, K) -> pooled (G, B*P, 128); one batch tile per step."""
    g, _, rows, k = patches.shape
    c = w.shape[1]
    return pl.pallas_call(
        _conv_relu_pool_kernel,
        grid=(g,),
        out_shape=jax.ShapeDtypeStruct((g, rows, c), jnp.float32),
        in_specs=[
            pl.BlockSpec((1, 4, rows, k), lambda i: (i, 0, 0, 0)),
            pl.BlockSpec((k, c), lambda i: (0, 0)),
            pl.BlockSpec((1, c), lambda i: (0, 0)),
        ],
        out_specs=pl.BlockSpec((1, rows, c), lambda i: (i, 0, 0)),
        compiler_params=pltpu.CompilerParams(
            dimension_semantics=("parallel",)),
    )(patches, w, b)


def _fc_stack_kernel(x_ref, w1_ref, b1_ref, w2_ref, b2_ref, w3_ref, b3_ref,
                     o_ref):
    """fc3(relu(fc2(relu(fc1(x))))) for one row tile; intermediates stay in VMEM."""
    h = jnp.dot(x_ref[...], w1_ref[...], preferred_element_type=jnp.float32)
    h = jnp.maximum(h + b1_ref[...], 0.0)
    h = jnp.dot(h, w2_ref[...], preferred_element_type=jnp.float32)
    h = jnp.maximum(h + b2_ref[...], 0.0)
    out = jnp.dot(h, w3_ref[...], preferred_element_type=jnp.float32)
    o_ref[...] = (out + b3_ref[...]).astype(o_ref.dtype)


def fc_stack(x, w1, b1, w2, b2, w3, b3, *, row_cap=256):
    """x: (M, K) -> (M, 128) lane-dense logits (padded output lanes included)."""
    m, k = x.shape
    n_out = w3.shape[1]                      # 128 (lane-dense)
    tm = min(row_cap, _round_up(m, 8))       # bounded row tile, (8,128)-legal
    m_pad = _round_up(m, tm)
    if m_pad != m:
        x = jnp.pad(x, ((0, m_pad - m), (0, 0)))
    out = pl.pallas_call(
        _fc_stack_kernel,
        grid=(m_pad // tm,),
        out_shape=jax.ShapeDtypeStruct((m_pad, n_out), jnp.float32),
        in_specs=[
            pl.BlockSpec((tm, k), lambda i: (i, 0)),
            pl.BlockSpec(w1.shape, lambda i: (0, 0)),
            pl.BlockSpec(b1.shape, lambda i: (0, 0)),
            pl.BlockSpec(w2.shape, lambda i: (0, 0)),
            pl.BlockSpec(b2.shape, lambda i: (0, 0)),
            pl.BlockSpec(w3.shape, lambda i: (0, 0)),
            pl.BlockSpec(b3.shape, lambda i: (0, 0)),
        ],
        out_specs=pl.BlockSpec((tm, n_out), lambda i: (i, 0)),
        compiler_params=pltpu.CompilerParams(
            dimension_semantics=("parallel",)),
    )(x, w1, b1, w2, b2, w3, b3)
    return out[:m]


# ---------------------------------------------------------------------------
# Host-side glue (im2col with pool-phase + batch-tile ordering) -- plain JAX
# ---------------------------------------------------------------------------
def _im2col_quadrants(x_nhwc, pad, batch_tile):
    """NHWC x -> (N/B, 4, B*(Ho//2)*(Wo//2), KH*KW*C) im2col patches.

    Patch features are ordered (ky, kx, c).  Rows are grouped by 2x2-pool phase
    q = 2*(r%2) + (c%2); inside each phase, B images' rows are concatenated,
    each running row-major over the pooled grid (r//2, c//2), so the fused
    kernel pools by max over the 4 phase slabs and each dot has M = B*P rows.
    """
    if pad:
        x_nhwc = jnp.pad(x_nhwc, ((0, 0), (pad, pad), (pad, pad), (0, 0)))
    n, hp, wp, c = x_nhwc.shape
    assert n % batch_tile == 0
    ho, wo = hp - KH + 1, wp - KW + 1
    assert ho % 2 == 0 and wo % 2 == 0, "2x2 pool needs even conv output dims"
    k_feat = KH * KW * c
    taps = []
    for ky in range(KH):
        for kx in range(KW):
            taps.append(x_nhwc[:, ky:ky + ho, kx:kx + wo, :])   # (N, Ho, Wo, C)
    p = jnp.stack(taps, axis=3).reshape(n, ho, wo, k_feat)
    p = p.reshape(n, ho // 2, 2, wo // 2, 2, k_feat)
    p = p.transpose(0, 2, 4, 1, 3, 5)            # (N, 2, 2, Ho/2, Wo/2, K)
    p_rows = (ho // 2) * (wo // 2)
    p = p.reshape(n // batch_tile, batch_tile, 4, p_rows, k_feat)
    p = p.transpose(0, 2, 1, 3, 4)               # (N/B, 4, B, P, K)
    return p.reshape(n // batch_tile, 4, batch_tile * p_rows, k_feat), ho, wo


# ---------------------------------------------------------------------------
# Parameters
# ---------------------------------------------------------------------------
def _uniform(key, shape, bound):
    return jax.random.uniform(key, shape, jnp.float32, -bound, bound)


def init_lenet_params(key, input_channels, input_dims, num_classes):
    """PyTorch-layout params, PyTorch-default-style (kaiming-uniform) init."""
    ks = jax.random.split(key, 10)
    pad1 = 2 if input_dims == 28 else 0            # static Python int
    out_classes = 1 if num_classes <= 2 else num_classes

    def conv_init(kw_, kb_, cout, cin, k):
        bound = 1.0 / float(cin * k * k) ** 0.5
        return _uniform(kw_, (cout, cin, k, k), bound), _uniform(kb_, (cout,), bound)

    def fc_init(kw_, kb_, fout, fin):
        bound = 1.0 / float(fin) ** 0.5
        return _uniform(kw_, (fout, fin), bound), _uniform(kb_, (fout,), bound)

    w1, b1 = conv_init(ks[0], ks[1], 6, input_channels, 5)
    w2, b2 = conv_init(ks[2], ks[3], 16, 6, 5)
    fw1, fb1 = fc_init(ks[4], ks[5], 120, 16 * 5 * 5)
    fw2, fb2 = fc_init(ks[6], ks[7], 84, 120)
    fw3, fb3 = fc_init(ks[8], ks[9], out_classes, 84)
    params = dict(w1=w1, b1=b1, w2=w2, b2=b2,
                  fw1=fw1, fb1=fb1, fw2=fw2, fb2=fb2, fw3=fw3, fb3=fb3)
    return params, pad1


def prepare_kernel_params(p):
    """Fold all layout transforms / lane padding into the weights, once."""
    c1, cin = p["w1"].shape[0], p["w1"].shape[1]        # 6, input_channels
    c2 = p["w2"].shape[0]                               # 16
    h1, h2 = p["fw1"].shape[0], p["fw2"].shape[0]       # 120, 84
    out_c = p["fw3"].shape[0]

    # conv1: (c1, cin, 5, 5) -> (25*cin, LANE); feature order (ky, kx, c)
    w1 = p["w1"].transpose(2, 3, 1, 0).reshape(KH * KW * cin, c1)
    W1 = jnp.zeros((KH * KW * cin, LANE), jnp.float32).at[:, :c1].set(w1)
    B1 = jnp.zeros((1, LANE), jnp.float32).at[0, :c1].set(p["b1"])

    # conv2 consumes the COMPACTED c1 real channels (K = 25*c1 = 150)
    w2 = p["w2"].transpose(2, 3, 1, 0).reshape(KH * KW * c1, c2)
    W2 = jnp.zeros((KH * KW * c1, LANE), jnp.float32).at[:, :c2].set(w2)
    B2 = jnp.zeros((1, LANE), jnp.float32).at[0, :c2].set(p["b2"])

    # fc1: fold PyTorch's (C, H, W) flatten order into our (H, W, C) order,
    # compacted to K = 5*5*c2 = 400.
    fw1 = (p["fw1"].reshape(h1, c2, 5, 5)
           .transpose(2, 3, 1, 0).reshape(5 * 5 * c2, h1))
    FW1 = jnp.zeros((5 * 5 * c2, LANE), jnp.float32).at[:, :h1].set(fw1)
    FB1 = jnp.zeros((1, LANE), jnp.float32).at[0, :h1].set(p["fb1"])

    FW2 = jnp.zeros((LANE, LANE), jnp.float32).at[:h1, :h2].set(p["fw2"].T)
    FB2 = jnp.zeros((1, LANE), jnp.float32).at[0, :h2].set(p["fb2"])

    # fc3 lane-dense: pad output lanes to 128; real classes sliced outside.
    FW3 = jnp.zeros((LANE, LANE), jnp.float32).at[:h2, :out_c].set(p["fw3"].T)
    FB3 = jnp.zeros((1, LANE), jnp.float32).at[0, :out_c].set(p["fb3"])

    return dict(W1=W1, B1=B1, W2=W2, B2=B2,
                FW1=FW1, FB1=FB1, FW2=FW2, FB2=FB2, FW3=FW3, FB3=FB3)


# ---------------------------------------------------------------------------
# Forward passes
# ---------------------------------------------------------------------------
def lenet_forward_pallas(x_nchw, kp, *, pad1, c1=6, c2=16, out_classes=10,
                         batch_tile=8):
    n = x_nchw.shape[0]
    b = min(batch_tile, n)                               # images per grid step
    n_pad = _round_up(n, b)
    if n_pad != n:                                       # pad ragged batch
        x_nchw = jnp.pad(x_nchw, ((0, n_pad - n), (0, 0), (0, 0), (0, 0)))
    x = jnp.transpose(x_nchw, (0, 2, 3, 1))              # NHWC, once

    # conv1 + ReLU + pool (fused), b images per grid step
    patches, ho, wo = _im2col_quadrants(x, pad1, b)      # (n/b, 4, b*P1, 25*Cin)
    y = conv_relu_pool(patches, kp["W1"], kp["B1"])      # (n/b, b*P1, LANE)
    p1 = (ho // 2) * (wo // 2)
    y = y.reshape(n_pad, p1, LANE)[..., :c1]             # compact to c1 channels
    y = y.reshape(n_pad, ho // 2, wo // 2, c1)           # NHWC (contiguous)

    # conv2 + ReLU + pool (fused)
    patches, ho, wo = _im2col_quadrants(y, 0, b)         # (n/b, 4, b*25, 25*c1)
    y = conv_relu_pool(patches, kp["W2"], kp["B2"])      # (n/b, b*25, LANE)
    p2 = (ho // 2) * (wo // 2)

    # FC stack (fused fc1->relu->fc2->relu->fc3); flatten perm folded into FW1
    flat = y.reshape(n_pad, p2, LANE)[..., :c2].reshape(n_pad, p2 * c2)  # (n, 400)
    logits = fc_stack(flat, kp["FW1"], kp["FB1"], kp["FW2"], kp["FB2"],
                      kp["FW3"], kp["FB3"])              # (n_pad, LANE)
    return logits[:n, :out_classes]


def lenet_forward_ref(x, p, pad1):
    """Pure-JAX reference (PyTorch-layout params) for correctness checking."""
    def conv(x, w, b, pad):
        y = lax.conv_general_dilated(
            x, w, (1, 1), [(pad, pad), (pad, pad)],
            dimension_numbers=("NCHW", "OIHW", "NCHW"),
            precision=lax.Precision.HIGHEST)
        return y + b.reshape(1, -1, 1, 1)

    def pool(x):
        return lax.reduce_window(x, -jnp.inf, lax.max,
                                 (1, 1, 2, 2), (1, 1, 2, 2), "VALID")

    out = jax.nn.relu(conv(x, p["w1"], p["b1"], pad1))
    out = pool(out)
    out = jax.nn.relu(conv(out, p["w2"], p["b2"], 0))
    out = pool(out)
    out = out.reshape(out.shape[0], -1)
    out = jax.nn.relu(jnp.dot(out, p["fw1"].T, precision=lax.Precision.HIGHEST)
                      + p["fb1"])
    out = jax.nn.relu(jnp.dot(out, p["fw2"].T, precision=lax.Precision.HIGHEST)
                      + p["fb2"])
    return jnp.dot(out, p["fw3"].T, precision=lax.Precision.HIGHEST) + p["fb3"]


# ---------------------------------------------------------------------------
if __name__ == "__main__":
    key = jax.random.PRNGKey(0)
    k_param, k_x = jax.random.split(key)

    # fc1 fixes the 16*5*5 flatten, which forces 28x28 (pad=2) or 32x32 inputs.
    input_channels, input_dims, num_classes = 3, 28, 10
    params, pad1 = init_lenet_params(k_param, input_channels, input_dims,
                                     num_classes)
    kparams = prepare_kernel_params(params)       # layout folding, done once
    out_classes = params["fw3"].shape[0]

    x = jax.random.normal(k_x, (2, input_channels, input_dims, input_dims),
                          dtype=jnp.float32)

    fwd = jax.jit(functools.partial(
        lenet_forward_pallas, pad1=pad1, c1=6, c2=16,
        out_classes=out_classes, batch_tile=8))
    out = jax.block_until_ready(fwd(x, kparams))

    ref = lenet_forward_ref(x, params, pad1)
    assert out.shape == (2, num_classes), out.shape
    max_err = float(jnp.max(jnp.abs(out - ref)))
    assert jnp.allclose(out, ref, atol=1e-3, rtol=1e-3), \
        f"max abs diff {max_err}"

    print("KERNEL_OK")
</pallas_src>

<mosaic_0001>
module attributes {stable_mosaic.version = 11 : i64} {
  func.func @_conv_relu_pool_kernel(%arg0: i32, %arg1: memref<1x4x392x75xf32, #tpu.memory_space<vmem>>, %arg2: memref<75x128xf32, #tpu.memory_space<vmem>>, %arg3: memref<1x128xf32, #tpu.memory_space<vmem>>, %arg4: memref<1x392x128xf32, #tpu.memory_space<vmem>>) attributes {dimension_semantics = [#tpu.dimension_semantics<parallel>], iteration_bounds = array<i64: 1>, scalar_prefetch = 0 : i64, scratch_operands = 0 : i64, tpu.core_type = #tpu.core_type<tc>, window_params = [{transform_indices = @transform_0, window_bounds = array<i64: 1, 4, 392, 75>}, {pipeline_mode = #tpu.pipeline_mode<synchronous>, transform_indices = @transform_1, window_bounds = array<i64: 75, 128>}, {pipeline_mode = #tpu.pipeline_mode<synchronous>, transform_indices = @transform_2, window_bounds = array<i64: 1, 128>}, {transform_indices = @transform_3, window_bounds = array<i64: 1, 392, 128>}]} {
    %c0 = arith.constant 0 : index
    %c0_0 = arith.constant 0 : index
    %0 = vector.load %arg2[%c0, %c0_0] : memref<75x128xf32, #tpu.memory_space<vmem>>, vector<75x128xf32>
    %c0_1 = arith.constant 0 : index
    %c0_2 = arith.constant 0 : index
    %c0_3 = arith.constant 0 : index
    %c0_4 = arith.constant 0 : index
    %1 = vector.load %arg1[%c0_1, %c0_2, %c0_3, %c0_4] : memref<1x4x392x75xf32, #tpu.memory_space<vmem>>, vector<1x1x392x75xf32>
    %2 = vector.shape_cast %1 : vector<1x1x392x75xf32> to vector<392x75xf32>
    %cst = arith.constant dense<0.000000e+00> : vector<392x128xf32>
    %3 = tpu.matmul %2, %0, %cst {dimension_numbers = #tpu.dot_dimension_numbers<[1], [0], [0], [1], [0, 0, 1, 1], [], []>} : vector<392x75xf32>, vector<75x128xf32>, vector<392x128xf32> -> vector<392x128xf32>
    %c0_5 = arith.constant 0 : index
    %c1 = arith.constant 1 : index
    %c0_6 = arith.constant 0 : index
    %c0_7 = arith.constant 0 : index
    %4 = vector.load %arg1[%c0_5, %c1, %c0_6, %c0_7] : memref<1x4x392x75xf32, #tpu.memory_space<vmem>>, vector<1x1x392x75xf32>
    %5 = vector.shape_cast %4 : vector<1x1x392x75xf32> to vector<392x75xf32>
    %cst_8 = arith.constant dense<0.000000e+00> : vector<392x128xf32>
    %6 = tpu.matmul %5, %0, %cst_8 {dimension_numbers = #tpu.dot_dimension_numbers<[1], [0], [0], [1], [0, 0, 1, 1], [], []>} : vector<392x75xf32>, vector<75x128xf32>, vector<392x128xf32> -> vector<392x128xf32>
    %7 = arith.maximumf %3, %6 : vector<392x128xf32>
    %c0_9 = arith.constant 0 : index
    %c2 = arith.constant 2 : index
    %c0_10 = arith.constant 0 : index
    %c0_11 = arith.constant 0 : index
    %8 = vector.load %arg1[%c0_9, %c2, %c0_10, %c0_11] : memref<1x4x392x75xf32, #tpu.memory_space<vmem>>, vector<1x1x392x75xf32>
    %9 = vector.shape_cast %8 : vector<1x1x392x75xf32> to vector<392x75xf32>
    %cst_12 = arith.constant dense<0.000000e+00> : vector<392x128xf32>
    %10 = tpu.matmul %9, %0, %cst_12 {dimension_numbers = #tpu.dot_dimension_numbers<[1], [0], [0], [1], [0, 0, 1, 1], [], []>} : vector<392x75xf32>, vector<75x128xf32>, vector<392x128xf32> -> vector<392x128xf32>
    %11 = arith.maximumf %7, %10 : vector<392x128xf32>
    %c0_13 = arith.constant 0 : index
    %c3 = arith.constant 3 : index
    %c0_14 = arith.constant 0 : index
    %c0_15 = arith.constant 0 : index
    %12 = vector.load %arg1[%c0_13, %c3, %c0_14, %c0_15] : memref<1x4x392x75xf32, #tpu.memory_space<vmem>>, vector<1x1x392x75xf32>
    %13 = vector.shape_cast %12 : vector<1x1x392x75xf32> to vector<392x75xf32>
    %cst_16 = arith.constant dense<0.000000e+00> : vector<392x128xf32>
    %14 = tpu.matmul %13, %0, %cst_16 {dimension_numbers = #tpu.dot_dimension_numbers<[1], [0], [0], [1], [0, 0, 1, 1], [], []>} : vector<392x75xf32>, vector<75x128xf32>, vector<392x128xf32> -> vector<392x128xf32>
    %15 = arith.maximumf %11, %14 : vector<392x128xf32>
    %c0_17 = arith.constant 0 : index
    %c0_18 = arith.constant 0 : index
    %16 = vector.load %arg3[%c0_17, %c0_18] : memref<1x128xf32, #tpu.memory_space<vmem>>, vector<1x128xf32>
    %17 = vector.broadcast %16 : vector<1x128xf32> to vector<392x128xf32>
    %18 = arith.addf %15, %17 : vector<392x128xf32>
    %cst_19 = arith.constant 0.000000e+00 : f32
    %19 = vector.broadcast %cst_19 : f32 to vector<392x128xf32>
    %20 = arith.maximumf %18, %19 : vector<392x128xf32>
    %c0_20 = arith.constant 0 : index
    %c0_21 = arith.constant 0 : index
    %c0_22 = arith.constant 0 : index
    %21 = vector.load %arg4[%c0_20, %c0_21, %c0_22] : memref<1x392x128xf32, #tpu.memory_space<vmem>>, vector<1x392x128xf32>
    %22 = vector.shape_cast %21 : vector<1x392x128xf32> to vector<392x128xf32>
    %23 = vector.shape_cast %20 : vector<392x128xf32> to vector<1x392x128xf32>
    tpu.vector_store %arg4[%c0_20, %c0_21, %c0_22], %23 {strides = array<i32>} : memref<1x392x128xf32, #tpu.memory_space<vmem>>, vector<1x392x128xf32>,
    return
  }
  func.func @transform_0(%arg0: i32) -> (i32, i32, i32, i32) {
    %c0_i32 = arith.constant 0 : i32
    %c0_i32_0 = arith.constant 0 : i32
    %c0_i32_1 = arith.constant 0 : i32
    %c0_i32_2 = arith.constant 0 : i32
    return %arg0, %c0_i32, %c0_i32_0, %c0_i32_1 : i32, i32, i32, i32
  }
  func.func @transform_1(%arg0: i32) -> (i32, i32) {
    %c0_i32 = arith.constant 0 : i32
    %c0_i32_0 = arith.constant 0 : i32
    %c0_i32_1 = arith.constant 0 : i32
    return %c0_i32, %c0_i32_0 : i32, i32
  }
  func.func @transform_2(%arg0: i32) -> (i32, i32) {
    %c0_i32 = arith.constant 0 : i32
    %c0_i32_0 = arith.constant 0 : i32
    %c0_i32_1 = arith.constant 0 : i32
    return %c0_i32, %c0_i32_0 : i32, i32
  }
  func.func @transform_3(%arg0: i32) -> (i32, i32, i32) {
    %c0_i32 = arith.constant 0 : i32
    %c0_i32_0 = arith.constant 0 : i32
    %c0_i32_1 = arith.constant 0 : i32
    return %arg0, %c0_i32, %c0_i32_0 : i32, i32, i32
  }
}

module attributes {stable_mosaic.version = 11 : i64} {
  func.func @_conv_relu_pool_kernel(%arg0: i32, %arg1: memref<1x4x50x150xf32, #tpu.memory_space<vmem>>, %arg2: memref<150x128xf32, #tpu.memory_space<vmem>>, %arg3: memref<1x128xf32, #tpu.memory_space<vmem>>, %arg4: memref<1x50x128xf32, #tpu.memory_space<vmem>>) attributes {dimension_semantics = [#tpu.dimension_semantics<parallel>], iteration_bounds = array<i64: 1>, scalar_prefetch = 0 : i64, scratch_operands = 0 : i64, tpu.core_type = #tpu.core_type<tc>, window_params = [{transform_indices = @transform_0, window_bounds = array<i64: 1, 4, 50, 150>}, {pipeline_mode = #tpu.pipeline_mode<synchronous>, transform_indices = @transform_1, window_bounds = array<i64: 150, 128>}, {pipeline_mode = #tpu.pipeline_mode<synchronous>, transform_indices = @transform_2, window_bounds = array<i64: 1, 128>}, {transform_indices = @transform_3, window_bounds = array<i64: 1, 50, 128>}]} {
    %c0 = arith.constant 0 : index
    %c0_0 = arith.constant 0 : index
    %0 = vector.load %arg2[%c0, %c0_0] : memref<150x128xf32, #tpu.memory_space<vmem>>, vector<150x128xf32>
    %c0_1 = arith.constant 0 : index
    %c0_2 = arith.constant 0 : index
    %c0_3 = arith.constant 0 : index
    %c0_4 = arith.constant 0 : index
    %1 = vector.load %arg1[%c0_1, %c0_2, %c0_3, %c0_4] : memref<1x4x50x150xf32, #tpu.memory_space<vmem>>, vector<1x1x50x150xf32>
    %2 = vector.shape_cast %1 : vector<1x1x50x150xf32> to vector<50x150xf32>
    %cst = arith.constant dense<0.000000e+00> : vector<50x128xf32>
    %3 = tpu.matmul %2, %0, %cst {dimension_numbers = #tpu.dot_dimension_numbers<[1], [0], [0], [1], [0, 0, 1, 1], [], []>} : vector<50x150xf32>, vector<150x128xf32>, vector<50x128xf32> -> vector<50x128xf32>
    %c0_5 = arith.constant 0 : index
    %c1 = arith.constant 1 : index
    %c0_6 = arith.constant 0 : index
    %c0_7 = arith.constant 0 : index
    %4 = vector.load %arg1[%c0_5, %c1, %c0_6, %c0_7] : memref<1x4x50x150xf32, #tpu.memory_space<vmem>>, vector<1x1x50x150xf32>
    %5 = vector.shape_cast %4 : vector<1x1x50x150xf32> to vector<50x150xf32>
    %cst_8 = arith.constant dense<0.000000e+00> : vector<50x128xf32>
    %6 = tpu.matmul %5, %0, %cst_8 {dimension_numbers = #tpu.dot_dimension_numbers<[1], [0], [0], [1], [0, 0, 1, 1], [], []>} : vector<50x150xf32>, vector<150x128xf32>, vector<50x128xf32> -> vector<50x128xf32>
    %7 = arith.maximumf %3, %6 : vector<50x128xf32>
    %c0_9 = arith.constant 0 : index
    %c2 = arith.constant 2 : index
    %c0_10 = arith.constant 0 : index
    %c0_11 = arith.constant 0 : index
    %8 = vector.load %arg1[%c0_9, %c2, %c0_10, %c0_11] : memref<1x4x50x150xf32, #tpu.memory_space<vmem>>, vector<1x1x50x150xf32>
    %9 = vector.shape_cast %8 : vector<1x1x50x150xf32> to vector<50x150xf32>
    %cst_12 = arith.constant dense<0.000000e+00> : vector<50x128xf32>
    %10 = tpu.matmul %9, %0, %cst_12 {dimension_numbers = #tpu.dot_dimension_numbers<[1], [0], [0], [1], [0, 0, 1, 1], [], []>} : vector<50x150xf32>, vector<150x128xf32>, vector<50x128xf32> -> vector<50x128xf32>
    %11 = arith.maximumf %7, %10 : vector<50x128xf32>
    %c0_13 = arith.constant 0 : index
    %c3 = arith.constant 3 : index
    %c0_14 = arith.constant 0 : index
    %c0_15 = arith.constant 0 : index
    %12 = vector.load %arg1[%c0_13, %c3, %c0_14, %c0_15] : memref<1x4x50x150xf32, #tpu.memory_space<vmem>>, vector<1x1x50x150xf32>
    %13 = vector.shape_cast %12 : vector<1x1x50x150xf32> to vector<50x150xf32>
    %cst_16 = arith.constant dense<0.000000e+00> : vector<50x128xf32>
    %14 = tpu.matmul %13, %0, %cst_16 {dimension_numbers = #tpu.dot_dimension_numbers<[1], [0], [0], [1], [0, 0, 1, 1], [], []>} : vector<50x150xf32>, vector<150x128xf32>, vector<50x128xf32> -> vector<50x128xf32>
    %15 = arith.maximumf %11, %14 : vector<50x128xf32>
    %c0_17 = arith.constant 0 : index
    %c0_18 = arith.constant 0 : index
    %16 = vector.load %arg3[%c0_17, %c0_18] : memref<1x128xf32, #tpu.memory_space<vmem>>, vector<1x128xf32>
    %17 = vector.broadcast %16 : vector<1x128xf32> to vector<50x128xf32>
    %18 = arith.addf %15, %17 : vector<50x128xf32>
    %cst_19 = arith.constant 0.000000e+00 : f32
    %19 = vector.broadcast %cst_19 : f32 to vector<50x128xf32>
    %20 = arith.maximumf %18, %19 : vector<50x128xf32>
    %c0_20 = arith.constant 0 : index
    %c0_21 = arith.constant 0 : index
    %c0_22 = arith.constant 0 : index
    %21 = vector.load %arg4[%c0_20, %c0_21, %c0_22] : memref<1x50x128xf32, #tpu.memory_space<vmem>>, vector<1x50x128xf32>
    %22 = vector.shape_cast %21 : vector<1x50x128xf32> to vector<50x128xf32>
    %23 = vector.shape_cast %20 : vector<50x128xf32> to vector<1x50x128xf32>
    tpu.vector_store %arg4[%c0_20, %c0_21, %c0_22], %23 {strides = array<i32>} : memref<1x50x128xf32, #tpu.memory_space<vmem>>, vector<1x50x128xf32>,
    return
  }
  func.func @transform_0(%arg0: i32) -> (i32, i32, i32, i32) {
    %c0_i32 = arith.constant 0 : i32
    %c0_i32_0 = arith.constant 0 : i32
    %c0_i32_1 = arith.constant 0 : i32
    %c0_i32_2 = arith.constant 0 : i32
    return %arg0, %c0_i32, %c0_i32_0, %c0_i32_1 : i32, i32, i32, i32
  }
  func.func @transform_1(%arg0: i32) -> (i32, i32) {
    %c0_i32 = arith.constant 0 : i32
    %c0_i32_0 = arith.constant 0 : i32
    %c0_i32_1 = arith.constant 0 : i32
    return %c0_i32, %c0_i32_0 : i32, i32
  }
  func.func @transform_2(%arg0: i32) -> (i32, i32) {
    %c0_i32 = arith.constant 0 : i32
    %c0_i32_0 = arith.constant 0 : i32
    %c0_i32_1 = arith.constant 0 : i32
    return %c0_i32, %c0_i32_0 : i32, i32
  }
  func.func @transform_3(%arg0: i32) -> (i32, i32, i32) {
    %c0_i32 = arith.constant 0 : i32
    %c0_i32_0 = arith.constant 0 : i32
    %c0_i32_1 = arith.constant 0 : i32
    return %arg0, %c0_i32, %c0_i32_0 : i32, i32, i32
  }
}

module attributes {stable_mosaic.version = 11 : i64} {
  func.func @_fc_stack_kernel(%arg0: i32, %arg1: memref<8x400xf32, #tpu.memory_space<vmem>>, %arg2: memref<400x128xf32, #tpu.memory_space<vmem>>, %arg3: memref<1x128xf32, #tpu.memory_space<vmem>>, %arg4: memref<128x128xf32, #tpu.memory_space<vmem>>, %arg5: memref<1x128xf32, #tpu.memory_space<vmem>>, %arg6: memref<128x128xf32, #tpu.memory_space<vmem>>, %arg7: memref<1x128xf32, #tpu.memory_space<vmem>>, %arg8: memref<8x128xf32, #tpu.memory_space<vmem>>) attributes {dimension_semantics = [#tpu.dimension_semantics<parallel>], iteration_bounds = array<i64: 1>, scalar_prefetch = 0 : i64, scratch_operands = 0 : i64, tpu.core_type = #tpu.core_type<tc>, window_params = [{transform_indices = @transform_0, window_bounds = array<i64: 8, 400>}, {pipeline_mode = #tpu.pipeline_mode<synchronous>, transform_indices = @transform_1, window_bounds = array<i64: 400, 128>}, {pipeline_mode = #tpu.pipeline_mode<synchronous>, transform_indices = @transform_2, window_bounds = array<i64: 1, 128>}, {pipeline_mode = #tpu.pipeline_mode<synchronous>, transform_indices = @transform_3, window_bounds = array<i64: 128, 128>}, {pipeline_mode = #tpu.pipeline_mode<synchronous>, transform_indices = @transform_4, window_bounds = array<i64: 1, 128>}, {pipeline_mode = #tpu.pipeline_mode<synchronous>, transform_indices = @transform_5, window_bounds = array<i64: 128, 128>}, {pipeline_mode = #tpu.pipeline_mode<synchronous>, transform_indices = @transform_6, window_bounds = array<i64: 1, 128>}, {transform_indices = @transform_7, window_bounds = array<i64: 8, 128>}]} {
    %c0 = arith.constant 0 : index
    %c0_0 = arith.constant 0 : index
    %0 = vector.load %arg1[%c0, %c0_0] : memref<8x400xf32, #tpu.memory_space<vmem>>, vector<8x400xf32>
    %c0_1 = arith.constant 0 : index
    %c0_2 = arith.constant 0 : index
    %1 = vector.load %arg2[%c0_1, %c0_2] : memref<400x128xf32, #tpu.memory_space<vmem>>, vector<400x128xf32>
    %cst = arith.constant dense<0.000000e+00> : vector<8x128xf32>
    %2 = tpu.matmul %0, %1, %cst {dimension_numbers = #tpu.dot_dimension_numbers<[1], [0], [0], [1], [0, 0, 1, 1], [], []>} : vector<8x400xf32>, vector<400x128xf32>, vector<8x128xf32> -> vector<8x128xf32>
    %c0_3 = arith.constant 0 : index
    %c0_4 = arith.constant 0 : index
    %3 = vector.load %arg3[%c0_3, %c0_4] : memref<1x128xf32, #tpu.memory_space<vmem>>, vector<1x128xf32>
    %4 = vector.broadcast %3 : vector<1x128xf32> to vector<8x128xf32>
    %5 = arith.addf %2, %4 : vector<8x128xf32>
    %cst_5 = arith.constant 0.000000e+00 : f32
    %6 = vector.broadcast %cst_5 : f32 to vector<8x128xf32>
    %7 = arith.maximumf %5, %6 : vector<8x128xf32>
    %c0_6 = arith.constant 0 : index
    %c0_7 = arith.constant 0 : index
    %8 = vector.load %arg4[%c0_6, %c0_7] : memref<128x128xf32, #tpu.memory_space<vmem>>, vector<128x128xf32>
    %cst_8 = arith.constant dense<0.000000e+00> : vector<8x128xf32>
    %9 = tpu.matmul %7, %8, %cst_8 {dimension_numbers = #tpu.dot_dimension_numbers<[1], [0], [0], [1], [0, 0, 1, 1], [], []>} : vector<8x128xf32>, vector<128x128xf32>, vector<8x128xf32> -> vector<8x128xf32>
    %c0_9 = arith.constant 0 : index
    %c0_10 = arith.constant 0 : index
    %10 = vector.load %arg5[%c0_9, %c0_10] : memref<1x128xf32, #tpu.memory_space<vmem>>, vector<1x128xf32>
    %11 = vector.broadcast %10 : vector<1x128xf32> to vector<8x128xf32>
    %12 = arith.addf %9, %11 : vector<8x128xf32>
    %cst_11 = arith.constant 0.000000e+00 : f32
    %13 = vector.broadcast %cst_11 : f32 to vector<8x128xf32>
    %14 = arith.maximumf %12, %13 : vector<8x128xf32>
    %c0_12 = arith.constant 0 : index
    %c0_13 = arith.constant 0 : index
    %15 = vector.load %arg6[%c0_12, %c0_13] : memref<128x128xf32, #tpu.memory_space<vmem>>, vector<128x128xf32>
    %cst_14 = arith.constant dense<0.000000e+00> : vector<8x128xf32>
    %16 = tpu.matmul %14, %15, %cst_14 {dimension_numbers = #tpu.dot_dimension_numbers<[1], [0], [0], [1], [0, 0, 1, 1], [], []>} : vector<8x128xf32>, vector<128x128xf32>, vector<8x128xf32> -> vector<8x128xf32>
    %c0_15 = arith.constant 0 : index
    %c0_16 = arith.constant 0 : index
    %17 = vector.load %arg7[%c0_15, %c0_16] : memref<1x128xf32, #tpu.memory_space<vmem>>, vector<1x128xf32>
    %18 = vector.broadcast %17 : vector<1x128xf32> to vector<8x128xf32>
    %19 = arith.addf %16, %18 : vector<8x128xf32>
    %c0_17 = arith.constant 0 : index
    %c0_18 = arith.constant 0 : index
    %20 = vector.load %arg8[%c0_17, %c0_18] : memref<8x128xf32, #tpu.memory_space<vmem>>, vector<8x128xf32>
    tpu.vector_store %arg8[%c0_17, %c0_18], %19 {strides = array<i32>} : memref<8x128xf32, #tpu.memory_space<vmem>>, vector<8x128xf32>,
    return
  }
  func.func @transform_0(%arg0: i32) -> (i32, i32) {
    %c0_i32 = arith.constant 0 : i32
    %c0_i32_0 = arith.constant 0 : i32
    return %arg0, %c0_i32 : i32, i32
  }
  func.func @transform_1(%arg0: i32) -> (i32, i32) {
    %c0_i32 = arith.constant 0 : i32
    %c0_i32_0 = arith.constant 0 : i32
    %c0_i32_1 = arith.constant 0 : i32
    return %c0_i32, %c0_i32_0 : i32, i32
  }
  func.func @transform_2(%arg0: i32) -> (i32, i32) {
    %c0_i32 = arith.constant 0 : i32
    %c0_i32_0 = arith.constant 0 : i32
    %c0_i32_1 = arith.constant 0 : i32
    return %c0_i32, %c0_i32_0 : i32, i32
  }
  func.func @transform_3(%arg0: i32) -> (i32, i32) {
    %c0_i32 = arith.constant 0 : i32
    %c0_i32_0 = arith.constant 0 : i32
    %c0_i32_1 = arith.constant 0 : i32
    return %c0_i32, %c0_i32_0 : i32, i32
  }
  func.func @transform_4(%arg0: i32) -> (i32, i32) {
    %c0_i32 = arith.constant 0 : i32
    %c0_i32_0 = arith.constant 0 : i32
    %c0_i32_1 = arith.constant 0 : i32
    return %c0_i32, %c0_i32_0 : i32, i32
  }
  func.func @transform_5(%arg0: i32) -> (i32, i32) {
    %c0_i32 = arith.constant 0 : i32
    %c0_i32_0 = arith.constant 0 : i32
    %c0_i32_1 = arith.constant 0 : i32
    return %c0_i32, %c0_i32_0 : i32, i32
  }
  func.func @transform_6(%arg0: i32) -> (i32, i32) {
    %c0_i32 = arith.constant 0 : i32
    %c0_i32_0 = arith.constant 0 : i32
    %c0_i32_1 = arith.constant 0 : i32
    return %c0_i32, %c0_i32_0 : i32, i32
  }
  func.func @transform_7(%arg0: i32) -> (i32, i32) {
    %c0_i32 = arith.constant 0 : i32
    %c0_i32_0 = arith.constant 0 : i32
    return %arg0, %c0_i32 : i32, i32
  }
}

</mosaic_0001>

<bundles_post_ra>
// kernel: lenet_forward_pallas.3
= control target key start
LH: loop header
LB: loop body
LE: loop exit
PB: predicated region body
PF: predicated region fallthrough
CT: control target
= control target key end

     0   :  { %vm221_vm0 = vcmask 1042432   ;;  %vm73_vm1 = vcmask 613376   ;;  %s3163_s1 = inlined_call_operand.vmem [shape: f32[75,128], index: 1, kind: input, shape index: {}]   ;;  %s3164_s0 = inlined_call_operand.vmem [shape: f32[1,4,392,75], index: 0, kind: input, shape index: {}]   ;;  %s3165_s2 = inlined_call_operand.vmem [shape: f32[1,128], index: 2, kind: input, shape index: {}]   ;;  %s3166_s3 = inlined_call_operand.vmem [shape: f32[1,392,128], index: 3, kind: output, shape index: {}]  }
   0x1   :  { %v23_v0 = vld [vmem:[%s3163_s1 + $0x48] sm:$0x7]  ;;  %v22_v1 = vld [vmem:[%s3163_s1 + $0x40] sm:$0xff]  ;;  %v21_v2 = vld [vmem:[%s3163_s1 + $0x38] sm:$0xff] }
   0x2   :  { %1972 = vmatpush.msk.msra.mxu2 %vm221_vm0, %v23_v0  ;;  %2071 = vmatpush.msk.msra.mxu3 %vm221_vm0, %v23_v0  ;;  %v20_v3 = vld [vmem:[%s3163_s1 + $0x30] sm:$0xff]  ;;  %v19_v4 = vld [vmem:[%s3163_s1 + $0x28] sm:$0xff]  ;;  %v18_v5 = vld [vmem:[%s3163_s1 + $0x20] sm:$0xff] }
   0x3   :  { %1774 = vmatpush.msk.msra.mxu0 %vm221_vm0, %v23_v0  ;;  %1873 = vmatpush.msk.msra.mxu1 %vm221_vm0, %v23_v0  ;;  %v17_v6 = vld [vmem:[%s3163_s1 + $0x18] sm:$0xff]  ;;  %v16_v7 = vld [vmem:[%s3163_s1 + $0x10] sm:$0xff]  ;;  %v15_v8 = vld [vmem:[%s3163_s1 + $0x8] sm:$0xff] }
   0x4   :  { %1003 = vmatpush.msra.mxu2 %v22_v1  ;;  %1413 = vmatpush.msra.mxu3 %v22_v1  ;;  %v14_v9 = vld [vmem:[%s3163_s1] sm:$0xff]  ;;  %v1923_v10 = vld [vmem:[%s3164_s0 + $0x310] sm:$0xff]  ;;  %v2022_v11 = vld [vmem:[%s3164_s0 + $0x498] sm:$0xff] }
   0x5   :  { %232 = vmatpush.msra.mxu0 %v22_v1  ;;  %593 = vmatpush.msra.mxu1 %v22_v1  ;;  %v24_v12 = vld [vmem:[%s3164_s0] sm:$0xff]  ;;  %v1824_v13 = vld [vmem:[%s3164_s0 + $0x188] sm:$0xff]  ;;  %v1924_v14 = vld [vmem:[%s3164_s0 + $0x318] sm:$0xff] }
   0x6   :  { %1004 = vmatpush.msra.mxu2 %v21_v2  ;;  %1414 = vmatpush.msra.mxu3 %v21_v2  ;;  %v2023_v15 = vld [vmem:[%s3164_s0 + $0x4a0] sm:$0xff]  ;;  %v25_v16 = vld [vmem:[%s3164_s0 + $0x8] sm:$0xff]  ;;  %v1825_v17 = vld [vmem:[%s3164_s0 + $0x190] sm:$0xff] }
   0x7   :  { %233 = vmatpush.msra.mxu0 %v21_v2  ;;  %594 = vmatpush.msra.mxu1 %v21_v2  ;;  %v1925_v18 = vld [vmem:[%s3164_s0 + $0x320] sm:$0xff]  ;;  %v2024_v19 = vld [vmem:[%s3164_s0 + $0x4a8] sm:$0xff]  ;;  %v26_v20 = vld [vmem:[%s3164_s0 + $0x10] sm:$0xff] }
   0x8   :  { %1005 = vmatpush.msra.mxu2 %v20_v3  ;;  %1415 = vmatpush.msra.mxu3 %v20_v3  ;;  %v1826_v21 = vld [vmem:[%s3164_s0 + $0x198] sm:$0xff]  ;;  %v1926_v22 = vld [vmem:[%s3164_s0 + $0x328] sm:$0xff]  ;;  %v2025_v23 = vld [vmem:[%s3164_s0 + $0x4b0] sm:$0xff] }
   0x9   :  { %234 = vmatpush.msra.mxu0 %v20_v3  ;;  %595 = vmatpush.msra.mxu1 %v20_v3  ;;  %v27_v24 = vld [vmem:[%s3164_s0 + $0x18] sm:$0xff]  ;;  %v1827_v25 = vld [vmem:[%s3164_s0 + $0x1a0] sm:$0xff]  ;;  %v1927_v26 = vld [vmem:[%s3164_s0 + $0x330] sm:$0xff] }
   0xa   :  { %1006 = vmatpush.msra.mxu2 %v19_v4  ;;  %1416 = vmatpush.msra.mxu3 %v19_v4  ;;  %v2026_v27 = vld [vmem:[%s3164_s0 + $0x4b8] sm:$0xff]  ;;  %v28_v28 = vld [vmem:[%s3164_s0 + $0x20] sm:$0xff]  ;;  %v1828_v29 = vld [vmem:[%s3164_s0 + $0x1a8] sm:$0xff] }
   0xb   :  { %235 = vmatpush.msra.mxu0 %v19_v4  ;;  %596 = vmatpush.msra.mxu1 %v19_v4  ;;  %v1928_v30 = vld [vmem:[%s3164_s0 + $0x338] sm:$0xff]  ;;  %v2027_v31 = vld [vmem:[%s3164_s0 + $0x4c0] sm:$0xff]  ;;  %v29_v32 = vld [vmem:[%s3164_s0 + $0x28] sm:$0xff] }
   0xc   :  { %1007 = vmatpush.msra.mxu2 %v18_v5  ;;  %1417 = vmatpush.msra.mxu3 %v18_v5  ;;  %v1829_v33 = vld [vmem:[%s3164_s0 + $0x1b0] sm:$0xff]  ;;  %v1929_v34 = vld [vmem:[%s3164_s0 + $0x340] sm:$0xff]  ;;  %v2028_v35 = vld [vmem:[%s3164_s0 + $0x4c8] sm:$0xff] }
   0xd   :  { %236 = vmatpush.msra.mxu0 %v18_v5  ;;  %597 = vmatpush.msra.mxu1 %v18_v5  ;;  %v30_v36 = vld [vmem:[%s3164_s0 + $0x30] sm:$0xff]  ;;  %v1830_v37 = vld [vmem:[%s3164_s0 + $0x1b8] sm:$0xff]  ;;  %v1930_v38 = vld [vmem:[%s3164_s0 + $0x348] sm:$0xff] }
   0xe   :  { %1008 = vmatpush.msra.mxu2 %v17_v6  ;;  %1418 = vmatpush.msra.mxu3 %v17_v6  ;;  %v2029_v39 = vld [vmem:[%s3164_s0 + $0x4d0] sm:$0xff]  ;;  %v31_v40 = vld [vmem:[%s3164_s0 + $0x38] sm:$0xff]  ;;  %v1831_v41 = vld [vmem:[%s3164_s0 + $0x1c0] sm:$0xff] }
   0xf   :  { %237 = vmatpush.msra.mxu0 %v17_v6  ;;  %598 = vmatpush.msra.mxu1 %v17_v6  ;;  %v1931_v42 = vld [vmem:[%s3164_s0 + $0x350] sm:$0xff]  ;;  %v2030_v43 = vld [vmem:[%s3164_s0 + $0x4d8] sm:$0xff]  ;;  %v32_v44 = vld [vmem:[%s3164_s0 + $0x40] sm:$0xff] }
  0x10   :  { %1009 = vmatpush.msra.mxu2 %v16_v7  ;;  %1419 = vmatpush.msra.mxu3 %v16_v7  ;;  %v1832_v45 = vld [vmem:[%s3164_s0 + $0x1c8] sm:$0xff]  ;;  %v1932_v46 = vld [vmem:[%s3164_s0 + $0x358] sm:$0xff]  ;;  %v2031_v47 = vld [vmem:[%s3164_s0 + $0x4e0] sm:$0xff] }
  0x11   :  { %238 = vmatpush.msra.mxu0 %v16_v7  ;;  %599 = vmatpush.msra.mxu1 %v16_v7  ;;  %v33_v48 = vld [vmem:[%s3164_s0 + $0x48] sm:$0xff]  ;;  %v1833_v49 = vld [vmem:[%s3164_s0 + $0x1d0] sm:$0xff]  ;;  %v1933_v50 = vld [vmem:[%s3164_s0 + $0x360] sm:$0xff] }
  0x12   :  { %1010 = vmatpush.msra.mxu2 %v15_v8  ;;  %1420 = vmatpush.msra.mxu3 %v15_v8  ;;  %v2032_v51 = vld [vmem:[%s3164_s0 + $0x4e8] sm:$0xff]  ;;  %v34_v52 = vld [vmem:[%s3164_s0 + $0x50] sm:$0xff]  ;;  %v1834_v53 = vld [vmem:[%s3164_s0 + $0x1d8] sm:$0xff] }
  0x13   :  { %239 = vmatpush.msra.mxu0 %v15_v8  ;;  %600 = vmatpush.msra.mxu1 %v15_v8  ;;  %v1934_v54 = vld [vmem:[%s3164_s0 + $0x368] sm:$0xff]  ;;  %v2033_v55 = vld [vmem:[%s3164_s0 + $0x4f0] sm:$0xff]  ;;  %v35_v56 = vld [vmem:[%s3164_s0 + $0x58] sm:$0xff] }
  0x14   :  { %1011 = vmatpush.msra.mxu2 %v14_v9  ;;  %1421 = vmatpush.msra.mxu3 %v14_v9  ;;  %v1835_v57 = vld [vmem:[%s3164_s0 + $0x1e0] sm:$0xff]  ;;  %v1935_v58 = vld [vmem:[%s3164_s0 + $0x370] sm:$0xff]  ;;  %v2034_v59 = vld [vmem:[%s3164_s0 + $0x4f8] sm:$0xff] }
  0x15   :  { %1973 = vmatmul.msk.f32.vlgmr.msra.gmra.mxu2 %vm73_vm1, %v1923_v10  ;;  %2072 = vmatmul.msk.f32.vlgmr.msra.gmra.mxu3 %vm73_vm1, %v2022_v11  ;;  %v36_v60 = vld [vmem:[%s3164_s0 + $0x60] sm:$0xff]  ;;  %v1836_v61 = vld [vmem:[%s3164_s0 + $0x1e8] sm:$0xff]  ;;  %v1936_v62 = vld [vmem:[%s3164_s0 + $0x378] sm:$0xff] }
  0x16   :  { %240 = vmatpush.msra.mxu0 %v14_v9  ;;  %601 = vmatpush.msra.mxu1 %v14_v9  ;;  %v2035_v63 = vld [vmem:[%s3164_s0 + $0x500] sm:$0xff]  ;;  %v37_v0 = vld [vmem:[%s3164_s0 + $0x68] sm:$0xff]  ;;  %v1837_v1 = vld [vmem:[%s3164_s0 + $0x1f0] sm:$0xff] }
  0x17   :  { %1775 = vmatmul.msk.f32.vlgmr.msra.gmra.mxu0 %vm73_vm1, %v24_v12  ;;  %1874 = vmatmul.msk.f32.vlgmr.msra.gmra.mxu1 %vm73_vm1, %v1824_v13  ;;  %v1937_v2 = vld [vmem:[%s3164_s0 + $0x380] sm:$0xff]  ;;  %v2036_v3 = vld [vmem:[%s3164_s0 + $0x508] sm:$0xff]  ;;  %v38_v4 = vld [vmem:[%s3164_s0 + $0x70] sm:$0xff] }
  0x18   :  { %v1838_v5 = vld [vmem:[%s3164_s0 + $0x1f8] sm:$0xff]  ;;  %v1938_v6 = vld [vmem:[%s3164_s0 + $0x388] sm:$0xff]  ;;  %v2037_v7 = vld [vmem:[%s3164_s0 + $0x510] sm:$0xff] }
  0x19   :  { %v39_v8 = vld [vmem:[%s3164_s0 + $0x78] sm:$0xff]  ;;  %v1839_v9 = vld [vmem:[%s3164_s0 + $0x200] sm:$0xff]  ;;  %v1939_v10 = vld [vmem:[%s3164_s0 + $0x390] sm:$0xff] }
  0x1a   :  { %v2038_v11 = vld [vmem:[%s3164_s0 + $0x518] sm:$0xff] }
  0x1d   :  { %1974 = vmatmul.msk.f32.gmra.mxu2 %vm73_vm1, %v1924_v14  ;;  %2073 = vmatmul.msk.f32.gmra.mxu3 %vm73_vm1, %v2023_v15  ;;  %v40_v14 = vld [vmem:[%s3164_s0 + $0x80] sm:$0xff]  ;;  %v1840_v15 = vld [vmem:[%s3164_s0 + $0x208] sm:$0xff] }
  0x1f   :  { %1776 = vmatmul.msk.f32.gmra.mxu0 %vm73_vm1, %v25_v16  ;;  %1875 = vmatmul.msk.f32.gmra.mxu1 %vm73_vm1, %v1825_v17 }
  0x25   :  { %1975 = vmatmul.msk.f32.gmra.mxu2 %vm73_vm1, %v1925_v18  ;;  %2074 = vmatmul.msk.f32.gmra.mxu3 %vm73_vm1, %v2024_v19 }
  0x27   :  { %1777 = vmatmul.msk.f32.gmra.mxu0 %vm73_vm1, %v26_v20  ;;  %1876 = vmatmul.msk.f32.gmra.mxu1 %vm73_vm1, %v1826_v21  ;;  %v2448_v20 = vld [vmem:[%s3165_s2] ss:$0 sm:$0xff]  ;;  %v1940_v21 = vld [vmem:[%s3164_s0 + $0x398] sm:$0xff] }
  0x2d   :  { %1976 = vmatmul.msk.f32.gmra.mxu2 %vm73_vm1, %v1926_v22  ;;  %2075 = vmatmul.msk.f32.gmra.mxu3 %vm73_vm1, %v2025_v23  ;;  %v2039_v22 = vld [vmem:[%s3164_s0 + $0x520] sm:$0xff] }
  0x2f   :  { %1778 = vmatmul.msk.f32.gmra.mxu0 %vm73_vm1, %v27_v24  ;;  %1877 = vmatmul.msk.f32.gmra.mxu1 %vm73_vm1, %v1827_v25 }
  0x35   :  { %1977 = vmatmul.msk.f32.gmra.mxu2 %vm73_vm1, %v1927_v26  ;;  %2076 = vmatmul.msk.f32.gmra.mxu3 %vm73_vm1, %v2026_v27  ;;  %v41_v26 = vld [vmem:[%s3164_s0 + $0x88] sm:$0xff]  ;;  %v1841_v27 = vld [vmem:[%s3164_s0 + $0x210] sm:$0xff] }
  0x37   :  { %1779 = vmatmul.msk.f32.gmra.mxu0 %vm73_vm1, %v28_v28  ;;  %1878 = vmatmul.msk.f32.gmra.mxu1 %vm73_vm1, %v1828_v29 }
  0x3d   :  { %1978 = vmatmul.msk.f32.gmra.mxu2 %vm73_vm1, %v1928_v30  ;;  %2077 = vmatmul.msk.f32.gmra.mxu3 %vm73_vm1, %v2027_v31 }
  0x3f   :  { %1780 = vmatmul.msk.f32.gmra.mxu0 %vm73_vm1, %v29_v32  ;;  %1879 = vmatmul.msk.f32.gmra.mxu1 %vm73_vm1, %v1829_v33 }
  0x45   :  { %1979 = vmatmul.msk.f32.gmra.mxu2 %vm73_vm1, %v1929_v34  ;;  %2078 = vmatmul.msk.f32.gmra.mxu3 %vm73_vm1, %v2028_v35  ;;  %v1941_v34 = vld [vmem:[%s3164_s0 + $0x3a0] sm:$0xff]  ;;  %v2040_v35 = vld [vmem:[%s3164_s0 + $0x528] sm:$0xff] }
  0x47   :  { %1781 = vmatmul.msk.f32.gmra.mxu0 %vm73_vm1, %v30_v36  ;;  %1880 = vmatmul.msk.f32.gmra.mxu1 %vm73_vm1, %v1830_v37 }
  0x4d   :  { %1980 = vmatmul.msk.f32.gmra.mxu2 %vm73_vm1, %v1930_v38  ;;  %2079 = vmatmul.msk.f32.gmra.mxu3 %vm73_vm1, %v2029_v39  ;;  %v42_v39 = vld [vmem:[%s3164_s0 + $0x90] sm:$0xff] }
  0x4f   :  { %1782 = vmatmul.msk.f32.gmra.mxu0 %vm73_vm1, %v31_v40  ;;  %1881 = vmatmul.msk.f32.gmra.mxu1 %vm73_vm1, %v1831_v41  ;;  %v1842_v40 = vld [vmem:[%s3164_s0 + $0x218] sm:$0xff] }
  0x55   :  { %1981 = vmatmul.msk.f32.gmra.mxu2 %vm73_vm1, %v1931_v42  ;;  %2080 = vmatmul.msk.f32.gmra.mxu3 %vm73_vm1, %v2030_v43 }
  0x57   :  { %1783 = vmatmul.msk.f32.gmra.mxu0 %vm73_vm1, %v32_v44  ;;  %1882 = vmatmul.msk.f32.gmra.mxu1 %vm73_vm1, %v1832_v45 }
  0x5d   :  { %1982 = vmatmul.msk.f32.gmra.mxu2 %vm73_vm1, %v1932_v46  ;;  %2081 = vmatmul.msk.f32.gmra.mxu3 %vm73_vm1, %v2031_v47  ;;  %v1942_v47 = vld [vmem:[%s3164_s0 + $0x3a8] sm:$0xff] }
  0x5f   :  { %1784 = vmatmul.msk.f32.gmra.mxu0 %vm73_vm1, %v33_v48  ;;  %1883 = vmatmul.msk.f32.gmra.mxu1 %vm73_vm1, %v1833_v49  ;;  %v2041_v48 = vld [vmem:[%s3164_s0 + $0x530] sm:$0xff] }
  0x65   :  { %1983 = vmatmul.msk.f32.gmra.mxu2 %vm73_vm1, %v1933_v50  ;;  %2082 = vmatmul.msk.f32.gmra.mxu3 %vm73_vm1, %v2032_v51 }
  0x67   :  { %1785 = vmatmul.msk.f32.gmra.mxu0 %vm73_vm1, %v34_v52  ;;  %1884 = vmatmul.msk.f32.gmra.mxu1 %vm73_vm1, %v1834_v53  ;;  %v43_v52 = vld [vmem:[%s3164_s0 + $0x98] sm:$0xff]  ;;  %v1843_v53 = vld [vmem:[%s3164_s0 + $0x220] sm:$0xff] }
  0x6d   :  { %1984 = vmatmul.msk.f32.gmra.mxu2 %vm73_vm1, %v1934_v54  ;;  %2083 = vmatmul.msk.f32.gmra.mxu3 %vm73_vm1, %v2033_v55 }
  0x6f   :  { %1786 = vmatmul.msk.f32.gmra.mxu0 %vm73_vm1, %v35_v56  ;;  %1885 = vmatmul.msk.f32.gmra.mxu1 %vm73_vm1, %v1835_v57 }
  0x75   :  { %1985 = vmatmul.msk.f32.gmra.mxu2 %vm73_vm1, %v1935_v58  ;;  %2084 = vmatmul.msk.f32.gmra.mxu3 %vm73_vm1, %v2034_v59 }
  0x77   :  { %1787 = vmatmul.msk.f32.gmra.mxu0 %vm73_vm1, %v36_v60  ;;  %1886 = vmatmul.msk.f32.gmra.mxu1 %vm73_vm1, %v1836_v61  ;;  %v1943_v60 = vld [vmem:[%s3164_s0 + $0x3b0] sm:$0xff]  ;;  %v2042_v61 = vld [vmem:[%s3164_s0 + $0x538] sm:$0xff] }
  0x7d   :  { %1986 = vmatmul.msk.f32.gmra.mxu2 %vm73_vm1, %v1936_v62  ;;  %2085 = vmatmul.msk.f32.gmra.mxu3 %vm73_vm1, %v2035_v63 }
  0x7f   :  { %1788 = vmatmul.msk.f32.gmra.mxu0 %vm73_vm1, %v37_v0  ;;  %1887 = vmatmul.msk.f32.gmra.mxu1 %vm73_vm1, %v1837_v1  ;;  %v44_v1 = vld [vmem:[%s3164_s0 + $0xa0] sm:$0xff] }
  0x85   :  { %1987 = vmatmul.msk.f32.gmra.mxu2 %vm73_vm1, %v1937_v2  ;;  %2086 = vmatmul.msk.f32.gmra.mxu3 %vm73_vm1, %v2036_v3  ;;  %v1844_v2 = vld [vmem:[%s3164_s0 + $0x228] sm:$0xff] }
  0x87   :  { %1789 = vmatmul.msk.f32.gmra.mxu0 %vm73_vm1, %v38_v4  ;;  %1888 = vmatmul.msk.f32.gmra.mxu1 %vm73_vm1, %v1838_v5 }
  0x8d   :  { %1988 = vmatmul.msk.f32.gmra.mxu2 %vm73_vm1, %v1938_v6  ;;  %2087 = vmatmul.msk.f32.gmra.mxu3 %vm73_vm1, %v2037_v7 }
  0x8f   :  { %1790 = vmatmul.msk.f32.gmra.mxu0 %vm73_vm1, %v39_v8  ;;  %1889 = vmatmul.msk.f32.gmra.mxu1 %vm73_vm1, %v1839_v9  ;;  %v1944_v9 = vld [vmem:[%s3164_s0 + $0x3b8] sm:$0xff] }
  0x94   :  { %v242_v12 = vpop.f32.mrf.mxu0  ;;  %v603_v13 = vpop.f32.mrf.mxu1 }
  0x95   :  { %1989 = vmatmul.msk.f32.gmra.mxu2 %vm73_vm1, %v1939_v10  ;;  %v750_v16 = vmax.f32 %v242_v12, %v603_v13  ;;  %2088 = vmatmul.msk.f32.gmra.mxu3 %vm73_vm1, %v2038_v11  ;;  %v2043_v10 = vld [vmem:[%s3164_s0 + $0x540] sm:$0xff] }
  0x97   :  { %1791 = vmatmul.msk.f32.gmra.mxu0 %vm73_vm1, %v40_v14  ;;  %1890 = vmatmul.msk.f32.gmra.mxu1 %vm73_vm1, %v1840_v15  ;;  %v45_v14 = vld [vmem:[%s3164_s0 + $0xa8] sm:$0xff]  ;;  %v1845_v15 = vld [vmem:[%s3164_s0 + $0x230] sm:$0xff] }
  0x98   :  { %v1013_v17 = vpop.f32.mrf.mxu2  ;;  %v1423_v18 = vpop.f32.mrf.mxu3 }
  0x99   :  { %v1160_v19 = vmax.f32 %v750_v16, %v1013_v17 }
  0x9b   :  { %v1570_v23 = vmax.f32 %v1160_v19, %v1423_v18 }
  0x9c   :  { %v245_v24 = vpop.f32.mrf.mxu0  ;;  %v606_v25 = vpop.f32.mrf.mxu1 }
  0x9d   :  { %v1623_v28 = vadd.f32 %v2448_v20, %v1570_v23  ;;  %1990 = vmatmul.msk.f32.gmra.mxu2 %vm73_vm1, %v1940_v21  ;;  %v751_v29 = vmax.f32 %v245_v24, %v606_v25  ;;  %2089 = vmatmul.msk.f32.gmra.mxu3 %vm73_vm1, %v2039_v22  ;;  %v1945_v23 = vld [vmem:[%s3164_s0 + $0x3c0] sm:$0xff]  ;;  %v2044_v24 = vld [vmem:[%s3164_s0 + $0x548] sm:$0xff] }
  0x9f   :  { %v1672_v30 = vmax.f32 %v1623_v28, 0.0  ;;  %1792 = vmatmul.msk.f32.gmra.mxu0 %vm73_vm1, %v41_v26  ;;  %1891 = vmatmul.msk.f32.gmra.mxu1 %vm73_vm1, %v1841_v27  ;;  %v46_v28 = vld [vmem:[%s3164_s0 + $0xb0] sm:$0xff] }
  0xa0   :  { %v1016_v31 = vpop.f32.mrf.mxu2  ;;  %v1426_v32 = vpop.f32.mrf.mxu3 }
  0xa1   :  { %1721 = vst [vmem:[%s3166_s3] sm:$0xff] %v1672_v30  ;;  %v1161_v33 = vmax.f32 %v751_v29, %v1016_v31  ;;  %v1846_v29 = vld [vmem:[%s3164_s0 + $0x238] sm:$0xff] }
  0xa3   :  { %v1571_v36 = vmax.f32 %v1161_v33, %v1426_v32 }
  0xa4   :  { %v248_v37 = vpop.f32.mrf.mxu0  ;;  %v609_v38 = vpop.f32.mrf.mxu1 }
  0xa5   :  { %v1624_v41 = vadd.f32 %v2448_v20, %v1571_v36  ;;  %1991 = vmatmul.msk.f32.gmra.mxu2 %vm73_vm1, %v1941_v34  ;;  %v752_v42 = vmax.f32 %v248_v37, %v609_v38  ;;  %2090 = vmatmul.msk.f32.gmra.mxu3 %vm73_vm1, %v2040_v35  ;;  %v1946_v36 = vld [vmem:[%s3164_s0 + $0x3c8] sm:$0xff]  ;;  %v2045_v37 = vld [vmem:[%s3164_s0 + $0x550] sm:$0xff] }
  0xa7   :  { %v1673_v43 = vmax.f32 %v1624_v41, 0.0  ;;  %1793 = vmatmul.msk.f32.gmra.mxu0 %vm73_vm1, %v42_v39  ;;  %1892 = vmatmul.msk.f32.gmra.mxu1 %vm73_vm1, %v1842_v40  ;;  %v47_v41 = vld [vmem:[%s3164_s0 + $0xb8] sm:$0xff] }
  0xa8   :  { %v1019_v44 = vpop.f32.mrf.mxu2  ;;  %v1429_v45 = vpop.f32.mrf.mxu3 }
  0xa9   :  { %1722 = vst [vmem:[%s3166_s3 + $0x8] sm:$0xff] %v1673_v43  ;;  %v1162_v46 = vmax.f32 %v752_v42, %v1019_v44  ;;  %v1847_v42 = vld [vmem:[%s3164_s0 + $0x240] sm:$0xff] }
  0xab   :  { %v1572_v49 = vmax.f32 %v1162_v46, %v1429_v45 }
  0xac   :  { %v251_v50 = vpop.f32.mrf.mxu0  ;;  %v612_v51 = vpop.f32.mrf.mxu1 }
  0xad   :  { %v1625_v54 = vadd.f32 %v2448_v20, %v1572_v49  ;;  %1992 = vmatmul.msk.f32.gmra.mxu2 %vm73_vm1, %v1942_v47  ;;  %v753_v55 = vmax.f32 %v251_v50, %v612_v51  ;;  %2091 = vmatmul.msk.f32.gmra.mxu3 %vm73_vm1, %v2041_v48  ;;  %v1947_v49 = vld [vmem:[%s3164_s0 + $0x3d0] sm:$0xff]  ;;  %v2046_v50 = vld [vmem:[%s3164_s0 + $0x558] sm:$0xff] }
  0xaf   :  { %v1674_v56 = vmax.f32 %v1625_v54, 0.0  ;;  %1794 = vmatmul.msk.f32.gmra.mxu0 %vm73_vm1, %v43_v52  ;;  %1893 = vmatmul.msk.f32.gmra.mxu1 %vm73_vm1, %v1843_v53  ;;  %v48_v54 = vld [vmem:[%s3164_s0 + $0xc0] sm:$0xff] }
  0xb0   :  { %v1022_v57 = vpop.f32.mrf.mxu2  ;;  %v1432_v58 = vpop.f32.mrf.mxu3 }
  0xb1   :  { %1723 = vst [vmem:[%s3166_s3 + $0x10] sm:$0xff] %v1674_v56  ;;  %v1163_v59 = vmax.f32 %v753_v55, %v1022_v57  ;;  %v1848_v55 = vld [vmem:[%s3164_s0 + $0x248] sm:$0xff] }
  0xb3   :  { %v1573_v62 = vmax.f32 %v1163_v59, %v1432_v58 }
  0xb4   :  { %v254_v63 = vpop.f32.mrf.mxu0  ;;  %v615_v0 = vpop.f32.mrf.mxu1 }
  0xb5   :  { %v1626_v3 = vadd.f32 %v2448_v20, %v1573_v62  ;;  %1993 = vmatmul.msk.f32.gmra.mxu2 %vm73_vm1, %v1943_v60  ;;  %v754_v4 = vmax.f32 %v254_v63, %v615_v0  ;;  %2092 = vmatmul.msk.f32.gmra.mxu3 %vm73_vm1, %v2042_v61  ;;  %v1948_v62 = vld [vmem:[%s3164_s0 + $0x3d8] sm:$0xff]  ;;  %v2047_v63 = vld [vmem:[%s3164_s0 + $0x560] sm:$0xff] }
  0xb7   :  { %v1675_v5 = vmax.f32 %v1626_v3, 0.0  ;;  %1795 = vmatmul.msk.f32.gmra.mxu0 %vm73_vm1, %v44_v1  ;;  %1894 = vmatmul.msk.f32.gmra.mxu1 %vm73_vm1, %v1844_v2  ;;  %v49_v3 = vld [vmem:[%s3164_s0 + $0xc8] sm:$0xff] }
  0xb8   :  { %v1025_v6 = vpop.f32.mrf.mxu2  ;;  %v1435_v7 = vpop.f32.mrf.mxu3 }
  0xb9   :  { %1724 = vst [vmem:[%s3166_s3 + $0x18] sm:$0xff] %v1675_v5  ;;  %v1164_v8 = vmax.f32 %v754_v4, %v1025_v6  ;;  %v1849_v4 = vld [vmem:[%s3164_s0 + $0x250] sm:$0xff] }
  0xbb   :  { %v1574_v11 = vmax.f32 %v1164_v8, %v1435_v7 }
  0xbc   :  { %v257_v12 = vpop.f32.mrf.mxu0  ;;  %v618_v13 = vpop.f32.mrf.mxu1 }
  0xbd   :  { %v1627_v16 = vadd.f32 %v2448_v20, %v1574_v11  ;;  %1994 = vmatmul.msk.f32.gmra.mxu2 %vm73_vm1, %v1944_v9  ;;  %v755_v17 = vmax.f32 %v257_v12, %v618_v13  ;;  %2093 = vmatmul.msk.f32.gmra.mxu3 %vm73_vm1, %v2043_v10  ;;  %v1949_v11 = vld [vmem:[%s3164_s0 + $0x3e0] sm:$0xff]  ;;  %v2048_v12 = vld [vmem:[%s3164_s0 + $0x568] sm:$0xff] }
  0xbf   :  { %v1676_v18 = vmax.f32 %v1627_v16, 0.0  ;;  %1796 = vmatmul.msk.f32.gmra.mxu0 %vm73_vm1, %v45_v14  ;;  %1895 = vmatmul.msk.f32.gmra.mxu1 %vm73_vm1, %v1845_v15  ;;  %v50_v16 = vld [vmem:[%s3164_s0 + $0xd0] sm:$0xff] }
  0xc0   :  { %v1028_v19 = vpop.f32.mrf.mxu2  ;;  %v1438_v21 = vpop.f32.mrf.mxu3 }
  0xc1   :  { %1725 = vst [vmem:[%s3166_s3 + $0x20] sm:$0xff] %v1676_v18  ;;  %v1165_v22 = vmax.f32 %v755_v17, %v1028_v19  ;;  %v1850_v17 = vld [vmem:[%s3164_s0 + $0x258] sm:$0xff] }
  0xc3   :  { %v1575_v25 = vmax.f32 %v1165_v22, %v1438_v21 }
  0xc4   :  { %v260_v26 = vpop.f32.mrf.mxu0  ;;  %v621_v27 = vpop.f32.mrf.mxu1 }
  0xc5   :  { %v1628_v30 = vadd.f32 %v2448_v20, %v1575_v25  ;;  %1995 = vmatmul.msk.f32.gmra.mxu2 %vm73_vm1, %v1945_v23  ;;  %v756_v31 = vmax.f32 %v260_v26, %v621_v27  ;;  %2094 = vmatmul.msk.f32.gmra.mxu3 %vm73_vm1, %v2044_v24  ;;  %v1950_v25 = vld [vmem:[%s3164_s0 + $0x3e8] sm:$0xff]  ;;  %v2049_v26 = vld [vmem:[%s3164_s0 + $0x570] sm:$0xff] }
  0xc7   :  { %v1677_v32 = vmax.f32 %v1628_v30, 0.0  ;;  %1797 = vmatmul.msk.f32.gmra.mxu0 %vm73_vm1, %v46_v28  ;;  %1896 = vmatmul.msk.f32.gmra.mxu1 %vm73_vm1, %v1846_v29  ;;  %v51_v30 = vld [vmem:[%s3164_s0 + $0xd8] sm:$0xff] }
  0xc8   :  { %v1031_v33 = vpop.f32.mrf.mxu2  ;;  %v1441_v34 = vpop.f32.mrf.mxu3 }
  0xc9   :  { %1726 = vst [vmem:[%s3166_s3 + $0x28] sm:$0xff] %v1677_v32  ;;  %v1166_v35 = vmax.f32 %v756_v31, %v1031_v33  ;;  %v1851_v31 = vld [vmem:[%s3164_s0 + $0x260] sm:$0xff] }
  0xcb   :  { %v1576_v38 = vmax.f32 %v1166_v35, %v1441_v34 }
  0xcc   :  { %v263_v39 = vpop.f32.mrf.mxu0  ;;  %v624_v40 = vpop.f32.mrf.mxu1 }
  0xcd   :  { %v1629_v43 = vadd.f32 %v2448_v20, %v1576_v38  ;;  %1996 = vmatmul.msk.f32.gmra.mxu2 %vm73_vm1, %v1946_v36  ;;  %v757_v44 = vmax.f32 %v263_v39, %v624_v40  ;;  %2095 = vmatmul.msk.f32.gmra.mxu3 %vm73_vm1, %v2045_v37  ;;  %v1951_v38 = vld [vmem:[%s3164_s0 + $0x3f0] sm:$0xff]  ;;  %v2050_v39 = vld [vmem:[%s3164_s0 + $0x578] sm:$0xff] }
  0xcf   :  { %v1678_v45 = vmax.f32 %v1629_v43, 0.0  ;;  %1798 = vmatmul.msk.f32.gmra.mxu0 %vm73_vm1, %v47_v41  ;;  %1897 = vmatmul.msk.f32.gmra.mxu1 %vm73_vm1, %v1847_v42  ;;  %v52_v43 = vld [vmem:[%s3164_s0 + $0xe0] sm:$0xff] }
  0xd0   :  { %v1034_v46 = vpop.f32.mrf.mxu2  ;;  %v1444_v47 = vpop.f32.mrf.mxu3 }
  0xd1   :  { %1727 = vst [vmem:[%s3166_s3 + $0x30] sm:$0xff] %v1678_v45  ;;  %v1167_v48 = vmax.f32 %v757_v44, %v1034_v46  ;;  %v1852_v44 = vld [vmem:[%s3164_s0 + $0x268] sm:$0xff] }
  0xd3   :  { %v1577_v51 = vmax.f32 %v1167_v48, %v1444_v47 }
  0xd4   :  { %v266_v52 = vpop.f32.mrf.mxu0  ;;  %v627_v53 = vpop.f32.mrf.mxu1 }
  0xd5   :  { %v1630_v56 = vadd.f32 %v2448_v20, %v1577_v51  ;;  %1997 = vmatmul.msk.f32.gmra.mxu2 %vm73_vm1, %v1947_v49  ;;  %v758_v57 = vmax.f32 %v266_v52, %v627_v53  ;;  %2096 = vmatmul.msk.f32.gmra.mxu3 %vm73_vm1, %v2046_v50  ;;  %v1952_v51 = vld [vmem:[%s3164_s0 + $0x3f8] sm:$0xff]  ;;  %v2051_v52 = vld [vmem:[%s3164_s0 + $0x580] sm:$0xff] }
  0xd7   :  { %v1679_v58 = vmax.f32 %v1630_v56, 0.0  ;;  %1799 = vmatmul.msk.f32.gmra.mxu0 %vm73_vm1, %v48_v54  ;;  %1898 = vmatmul.msk.f32.gmra.mxu1 %vm73_vm1, %v1848_v55  ;;  %v53_v56 = vld [vmem:[%s3164_s0 + $0xe8] sm:$0xff] }
  0xd8   :  { %v1037_v59 = vpop.f32.mrf.mxu2  ;;  %v1447_v60 = vpop.f32.mrf.mxu3 }
  0xd9   :  { %1728 = vst [vmem:[%s3166_s3 + $0x38] sm:$0xff] %v1679_v58  ;;  %v1168_v61 = vmax.f32 %v758_v57, %v1037_v59  ;;  %v1853_v57 = vld [vmem:[%s3164_s0 + $0x270] sm:$0xff] }
  0xdb   :  { %v1578_v0 = vmax.f32 %v1168_v61, %v1447_v60 }
  0xdc   :  { %v269_v1 = vpop.f32.mrf.mxu0  ;;  %v630_v2 = vpop.f32.mrf.mxu1 }
  0xdd   :  { %v1631_v5 = vadd.f32 %v2448_v20, %v1578_v0  ;;  %1998 = vmatmul.msk.f32.gmra.mxu2 %vm73_vm1, %v1948_v62  ;;  %v759_v6 = vmax.f32 %v269_v1, %v630_v2  ;;  %2097 = vmatmul.msk.f32.gmra.mxu3 %vm73_vm1, %v2047_v63  ;;  %v1953_v0 = vld [vmem:[%s3164_s0 + $0x400] sm:$0xff]  ;;  %v2052_v1 = vld [vmem:[%s3164_s0 + $0x588] sm:$0xff] }
  0xdf   :  { %v1680_v7 = vmax.f32 %v1631_v5, 0.0  ;;  %1800 = vmatmul.msk.f32.gmra.mxu0 %vm73_vm1, %v49_v3  ;;  %1899 = vmatmul.msk.f32.gmra.mxu1 %vm73_vm1, %v1849_v4  ;;  %v54_v5 = vld [vmem:[%s3164_s0 + $0xf0] sm:$0xff] }
  0xe0   :  { %v1040_v8 = vpop.f32.mrf.mxu2  ;;  %v1450_v9 = vpop.f32.mrf.mxu3 }
  0xe1   :  { %1729 = vst [vmem:[%s3166_s3 + $0x40] sm:$0xff] %v1680_v7  ;;  %v1169_v10 = vmax.f32 %v759_v6, %v1040_v8  ;;  %v1854_v6 = vld [vmem:[%s3164_s0 + $0x278] sm:$0xff] }
  0xe3   :  { %v1579_v13 = vmax.f32 %v1169_v10, %v1450_v9 }
  0xe4   :  { %v272_v14 = vpop.f32.mrf.mxu0  ;;  %v633_v15 = vpop.f32.mrf.mxu1 }
  0xe5   :  { %v1632_v18 = vadd.f32 %v2448_v20, %v1579_v13  ;;  %1999 = vmatmul.msk.f32.gmra.mxu2 %vm73_vm1, %v1949_v11  ;;  %v760_v19 = vmax.f32 %v272_v14, %v633_v15  ;;  %2098 = vmatmul.msk.f32.gmra.mxu3 %vm73_vm1, %v2048_v12  ;;  %v1954_v13 = vld [vmem:[%s3164_s0 + $0x408] sm:$0xff]  ;;  %v2053_v14 = vld [vmem:[%s3164_s0 + $0x590] sm:$0xff] }
  0xe7   :  { %v1681_v21 = vmax.f32 %v1632_v18, 0.0  ;;  %1801 = vmatmul.msk.f32.gmra.mxu0 %vm73_vm1, %v50_v16  ;;  %1900 = vmatmul.msk.f32.gmra.mxu1 %vm73_vm1, %v1850_v17  ;;  %v55_v18 = vld [vmem:[%s3164_s0 + $0xf8] sm:$0xff] }
  0xe8   :  { %v1043_v22 = vpop.f32.mrf.mxu2  ;;  %v1453_v23 = vpop.f32.mrf.mxu3 }
  0xe9   :  { %1730 = vst [vmem:[%s3166_s3 + $0x48] sm:$0xff] %v1681_v21  ;;  %v1170_v24 = vmax.f32 %v760_v19, %v1043_v22  ;;  %v1855_v19 = vld [vmem:[%s3164_s0 + $0x280] sm:$0xff] }
  0xeb   :  { %v1580_v27 = vmax.f32 %v1170_v24, %v1453_v23 }
  0xec   :  { %v275_v28 = vpop.f32.mrf.mxu0  ;;  %v636_v29 = vpop.f32.mrf.mxu1 }
  0xed   :  { %v1633_v32 = vadd.f32 %v2448_v20, %v1580_v27  ;;  %2000 = vmatmul.msk.f32.gmra.mxu2 %vm73_vm1, %v1950_v25  ;;  %v761_v33 = vmax.f32 %v275_v28, %v636_v29  ;;  %2099 = vmatmul.msk.f32.gmra.mxu3 %vm73_vm1, %v2049_v26  ;;  %v1955_v27 = vld [vmem:[%s3164_s0 + $0x410] sm:$0xff]  ;;  %v2054_v28 = vld [vmem:[%s3164_s0 + $0x598] sm:$0xff] }
  0xef   :  { %v1682_v34 = vmax.f32 %v1633_v32, 0.0  ;;  %1802 = vmatmul.msk.f32.gmra.mxu0 %vm73_vm1, %v51_v30  ;;  %1901 = vmatmul.msk.f32.gmra.mxu1 %vm73_vm1, %v1851_v31  ;;  %v56_v32 = vld [vmem:[%s3164_s0 + $0x100] sm:$0xff] }
  0xf0   :  { %v1046_v35 = vpop.f32.mrf.mxu2  ;;  %v1456_v36 = vpop.f32.mrf.mxu3 }
  0xf1   :  { %1731 = vst [vmem:[%s3166_s3 + $0x50] sm:$0xff] %v1682_v34  ;;  %v1171_v37 = vmax.f32 %v761_v33, %v1046_v35  ;;  %v1856_v33 = vld [vmem:[%s3164_s0 + $0x288] sm:$0xff] }
  0xf3   :  { %v1581_v40 = vmax.f32 %v1171_v37, %v1456_v36 }
  0xf4   :  { %v278_v41 = vpop.f32.mrf.mxu0  ;;  %v639_v42 = vpop.f32.mrf.mxu1 }
  0xf5   :  { %v1634_v45 = vadd.f32 %v2448_v20, %v1581_v40  ;;  %2001 = vmatmul.msk.f32.gmra.mxu2 %vm73_vm1, %v1951_v38  ;;  %v762_v46 = vmax.f32 %v278_v41, %v639_v42  ;;  %2100 = vmatmul.msk.f32.gmra.mxu3 %vm73_vm1, %v2050_v39  ;;  %v1956_v40 = vld [vmem:[%s3164_s0 + $0x418] sm:$0xff]  ;;  %v2055_v41 = vld [vmem:[%s3164_s0 + $0x5a0] sm:$0xff] }
  0xf7   :  { %v1683_v47 = vmax.f32 %v1634_v45, 0.0  ;;  %1803 = vmatmul.msk.f32.gmra.mxu0 %vm73_vm1, %v52_v43  ;;  %1902 = vmatmul.msk.f32.gmra.mxu1 %vm73_vm1, %v1852_v44  ;;  %v57_v45 = vld [vmem:[%s3164_s0 + $0x108] sm:$0xff] }
  0xf8   :  { %v1049_v48 = vpop.f32.mrf.mxu2  ;;  %v1459_v49 = vpop.f32.mrf.mxu3 }
  0xf9   :  { %1732 = vst [vmem:[%s3166_s3 + $0x58] sm:$0xff] %v1683_v47  ;;  %v1172_v50 = vmax.f32 %v762_v46, %v1049_v48  ;;  %v1857_v46 = vld [vmem:[%s3164_s0 + $0x290] sm:$0xff] }
  0xfb   :  { %v1582_v53 = vmax.f32 %v1172_v50, %v1459_v49 }
  0xfc   :  { %v281_v54 = vpop.f32.mrf.mxu0  ;;  %v642_v55 = vpop.f32.mrf.mxu1 }
  0xfd   :  { %v1635_v58 = vadd.f32 %v2448_v20, %v1582_v53  ;;  %2002 = vmatmul.msk.f32.gmra.mxu2 %vm73_vm1, %v1952_v51  ;;  %v763_v59 = vmax.f32 %v281_v54, %v642_v55  ;;  %2101 = vmatmul.msk.f32.gmra.mxu3 %vm73_vm1, %v2051_v52  ;;  %v1957_v53 = vld [vmem:[%s3164_s0 + $0x420] sm:$0xff]  ;;  %v2056_v54 = vld [vmem:[%s3164_s0 + $0x5a8] sm:$0xff] }
  0xff   :  { %v1684_v60 = vmax.f32 %v1635_v58, 0.0  ;;  %1804 = vmatmul.msk.f32.gmra.mxu0 %vm73_vm1, %v53_v56  ;;  %1903 = vmatmul.msk.f32.gmra.mxu1 %vm73_vm1, %v1853_v57  ;;  %v58_v58 = vld [vmem:[%s3164_s0 + $0x110] sm:$0xff] }
 0x100   :  { %v1052_v61 = vpop.f32.mrf.mxu2  ;;  %v1462_v62 = vpop.f32.mrf.mxu3 }
 0x101   :  { %1733 = vst [vmem:[%s3166_s3 + $0x60] sm:$0xff] %v1684_v60  ;;  %v1173_v63 = vmax.f32 %v763_v59, %v1052_v61  ;;  %v1858_v59 = vld [vmem:[%s3164_s0 + $0x298] sm:$0xff] }
 0x103   :  { %v1583_v2 = vmax.f32 %v1173_v63, %v1462_v62 }
 0x104   :  { %v284_v3 = vpop.f32.mrf.mxu0  ;;  %v645_v4 = vpop.f32.mrf.mxu1 }
 0x105   :  { %v1636_v7 = vadd.f32 %v2448_v20, %v1583_v2  ;;  %2003 = vmatmul.msk.f32.gmra.mxu2 %vm73_vm1, %v1953_v0  ;;  %v764_v8 = vmax.f32 %v284_v3, %v645_v4  ;;  %2102 = vmatmul.msk.f32.gmra.mxu3 %vm73_vm1, %v2052_v1  ;;  %v1958_v2 = vld [vmem:[%s3164_s0 + $0x428] sm:$0xff]  ;;  %v2057_v3 = vld [vmem:[%s3164_s0 + $0x5b0] sm:$0xff] }
 0x107   :  { %v1685_v9 = vmax.f32 %v1636_v7, 0.0  ;;  %1805 = vmatmul.msk.f32.gmra.mxu0 %vm73_vm1, %v54_v5  ;;  %1904 = vmatmul.msk.f32.gmra.mxu1 %vm73_vm1, %v1854_v6  ;;  %v59_v7 = vld [vmem:[%s3164_s0 + $0x118] sm:$0xff] }
 0x108   :  { %v1055_v10 = vpop.f32.mrf.mxu2  ;;  %v1465_v11 = vpop.f32.mrf.mxu3 }
 0x109   :  { %1734 = vst [vmem:[%s3166_s3 + $0x68] sm:$0xff] %v1685_v9  ;;  %v1174_v12 = vmax.f32 %v764_v8, %v1055_v10  ;;  %v1859_v8 = vld [vmem:[%s3164_s0 + $0x2a0] sm:$0xff] }
 0x10b   :  { %v1584_v15 = vmax.f32 %v1174_v12, %v1465_v11 }
 0x10c   :  { %v287_v16 = vpop.f32.mrf.mxu0  ;;  %v648_v17 = vpop.f32.mrf.mxu1 }
 0x10d   :  { %v1637_v21 = vadd.f32 %v2448_v20, %v1584_v15  ;;  %2004 = vmatmul.msk.f32.gmra.mxu2 %vm73_vm1, %v1954_v13  ;;  %v765_v22 = vmax.f32 %v287_v16, %v648_v17  ;;  %2103 = vmatmul.msk.f32.gmra.mxu3 %vm73_vm1, %v2053_v14  ;;  %v1959_v15 = vld [vmem:[%s3164_s0 + $0x430] sm:$0xff]  ;;  %v2058_v16 = vld [vmem:[%s3164_s0 + $0x5b8] sm:$0xff] }
 0x10f   :  { %v1686_v23 = vmax.f32 %v1637_v21, 0.0  ;;  %1806 = vmatmul.msk.f32.gmra.mxu0 %vm73_vm1, %v55_v18  ;;  %1905 = vmatmul.msk.f32.gmra.mxu1 %vm73_vm1, %v1855_v19  ;;  %v60_v21 = vld [vmem:[%s3164_s0 + $0x120] sm:$0xff] }
 0x110   :  { %v1058_v24 = vpop.f32.mrf.mxu2  ;;  %v1468_v25 = vpop.f32.mrf.mxu3 }
 0x111   :  { %1735 = vst [vmem:[%s3166_s3 + $0x70] sm:$0xff] %v1686_v23  ;;  %v1175_v26 = vmax.f32 %v765_v22, %v1058_v24  ;;  %v1860_v22 = vld [vmem:[%s3164_s0 + $0x2a8] sm:$0xff] }
 0x113   :  { %v1585_v29 = vmax.f32 %v1175_v26, %v1468_v25 }
 0x114   :  { %v290_v30 = vpop.f32.mrf.mxu0  ;;  %v651_v31 = vpop.f32.mrf.mxu1 }
 0x115   :  { %v1638_v34 = vadd.f32 %v2448_v20, %v1585_v29  ;;  %2005 = vmatmul.msk.f32.gmra.mxu2 %vm73_vm1, %v1955_v27  ;;  %v766_v35 = vmax.f32 %v290_v30, %v651_v31  ;;  %2104 = vmatmul.msk.f32.gmra.mxu3 %vm73_vm1, %v2054_v28  ;;  %v1960_v29 = vld [vmem:[%s3164_s0 + $0x438] sm:$0xff]  ;;  %v2059_v30 = vld [vmem:[%s3164_s0 + $0x5c0] sm:$0xff] }
 0x117   :  { %v1687_v36 = vmax.f32 %v1638_v34, 0.0  ;;  %1807 = vmatmul.msk.f32.gmra.mxu0 %vm73_vm1, %v56_v32  ;;  %1906 = vmatmul.msk.f32.gmra.mxu1 %vm73_vm1, %v1856_v33  ;;  %v61_v34 = vld [vmem:[%s3164_s0 + $0x128] sm:$0xff] }
 0x118   :  { %v1061_v37 = vpop.f32.mrf.mxu2  ;;  %v1471_v38 = vpop.f32.mrf.mxu3 }
 0x119   :  { %1736 = vst [vmem:[%s3166_s3 + $0x78] sm:$0xff] %v1687_v36  ;;  %v1176_v39 = vmax.f32 %v766_v35, %v1061_v37  ;;  %v1861_v35 = vld [vmem:[%s3164_s0 + $0x2b0] sm:$0xff] }
 0x11b   :  { %v1586_v42 = vmax.f32 %v1176_v39, %v1471_v38 }
 0x11c   :  { %v293_v43 = vpop.f32.mrf.mxu0  ;;  %v654_v44 = vpop.f32.mrf.mxu1 }
 0x11d   :  { %v1639_v47 = vadd.f32 %v2448_v20, %v1586_v42  ;;  %2006 = vmatmul.msk.f32.gmra.mxu2 %vm73_vm1, %v1956_v40  ;;  %v767_v48 = vmax.f32 %v293_v43, %v654_v44  ;;  %2105 = vmatmul.msk.f32.gmra.mxu3 %vm73_vm1, %v2055_v41  ;;  %v1961_v42 = vld [vmem:[%s3164_s0 + $0x440] sm:$0xff]  ;;  %v2060_v43 = vld [vmem:[%s3164_s0 + $0x5c8] sm:$0xff] }
 0x11f   :  { %v1688_v49 = vmax.f32 %v1639_v47, 0.0  ;;  %1808 = vmatmul.msk.f32.gmra.mxu0 %vm73_vm1, %v57_v45  ;;  %1907 = vmatmul.msk.f32.gmra.mxu1 %vm73_vm1, %v1857_v46  ;;  %v62_v47 = vld [vmem:[%s3164_s0 + $0x130] sm:$0xff] }
 0x120   :  { %v1064_v50 = vpop.f32.mrf.mxu2  ;;  %v1474_v51 = vpop.f32.mrf.mxu3 }
 0x121   :  { %1737 = vst [vmem:[%s3166_s3 + $0x80] sm:$0xff] %v1688_v49  ;;  %v1177_v52 = vmax.f32 %v767_v48, %v1064_v50  ;;  %v1862_v48 = vld [vmem:[%s3164_s0 + $0x2b8] sm:$0xff] }
 0x123   :  { %v1587_v55 = vmax.f32 %v1177_v52, %v1474_v51 }
 0x124   :  { %v296_v56 = vpop.f32.mrf.mxu0  ;;  %v657_v57 = vpop.f32.mrf.mxu1 }
 0x125   :  { %v1640_v60 = vadd.f32 %v2448_v20, %v1587_v55  ;;  %2007 = vmatmul.msk.f32.gmra.mxu2 %vm73_vm1, %v1957_v53  ;;  %v768_v61 = vmax.f32 %v296_v56, %v657_v57  ;;  %2106 = vmatmul.msk.f32.gmra.mxu3 %vm73_vm1, %v2056_v54  ;;  %v1962_v55 = vld [vmem:[%s3164_s0 + $0x448] sm:$0xff]  ;;  %v2061_v56 = vld [vmem:[%s3164_s0 + $0x5d0] sm:$0xff] }
 0x127   :  { %v1689_v62 = vmax.f32 %v1640_v60, 0.0  ;;  %1809 = vmatmul.msk.f32.gmra.mxu0 %vm73_vm1, %v58_v58  ;;  %1908 = vmatmul.msk.f32.gmra.mxu1 %vm73_vm1, %v1858_v59  ;;  %v63_v60 = vld [vmem:[%s3164_s0 + $0x138] sm:$0xff] }
 0x128   :  { %v1067_v63 = vpop.f32.mrf.mxu2  ;;  %v1477_v0 = vpop.f32.mrf.mxu3 }
 0x129   :  { %1738 = vst [vmem:[%s3166_s3 + $0x88] sm:$0xff] %v1689_v62  ;;  %v1178_v1 = vmax.f32 %v768_v61, %v1067_v63  ;;  %v1863_v61 = vld [vmem:[%s3164_s0 + $0x2c0] sm:$0xff] }
 0x12b   :  { %v1588_v4 = vmax.f32 %v1178_v1, %v1477_v0 }
 0x12c   :  { %v299_v5 = vpop.f32.mrf.mxu0  ;;  %v660_v6 = vpop.f32.mrf.mxu1 }
 0x12d   :  { %v1641_v9 = vadd.f32 %v2448_v20, %v1588_v4  ;;  %2008 = vmatmul.msk.f32.gmra.mxu2 %vm73_vm1, %v1958_v2  ;;  %v769_v10 = vmax.f32 %v299_v5, %v660_v6  ;;  %2107 = vmatmul.msk.f32.gmra.mxu3 %vm73_vm1, %v2057_v3  ;;  %v1963_v4 = vld [vmem:[%s3164_s0 + $0x450] sm:$0xff]  ;;  %v2062_v5 = vld [vmem:[%s3164_s0 + $0x5d8] sm:$0xff] }
 0x12f   :  { %v1690_v11 = vmax.f32 %v1641_v9, 0.0  ;;  %1810 = vmatmul.msk.f32.gmra.mxu0 %vm73_vm1, %v59_v7  ;;  %1909 = vmatmul.msk.f32.gmra.mxu1 %vm73_vm1, %v1859_v8  ;;  %v64_v9 = vld [vmem:[%s3164_s0 + $0x140] sm:$0xff] }
 0x130   :  { %v1070_v12 = vpop.f32.mrf.mxu2  ;;  %v1480_v13 = vpop.f32.mrf.mxu3 }
 0x131   :  { %1739 = vst [vmem:[%s3166_s3 + $0x90] sm:$0xff] %v1690_v11  ;;  %v1179_v14 = vmax.f32 %v769_v10, %v1070_v12  ;;  %v1864_v10 = vld [vmem:[%s3164_s0 + $0x2c8] sm:$0xff] }
 0x133   :  { %v1589_v17 = vmax.f32 %v1179_v14, %v1480_v13 }
 0x134   :  { %v302_v18 = vpop.f32.mrf.mxu0  ;;  %v663_v19 = vpop.f32.mrf.mxu1 }
 0x135   :  { %v1642_v23 = vadd.f32 %v2448_v20, %v1589_v17  ;;  %2009 = vmatmul.msk.f32.gmra.mxu2 %vm73_vm1, %v1959_v15  ;;  %v770_v24 = vmax.f32 %v302_v18, %v663_v19  ;;  %2108 = vmatmul.msk.f32.gmra.mxu3 %vm73_vm1, %v2058_v16  ;;  %v1964_v17 = vld [vmem:[%s3164_s0 + $0x458] sm:$0xff]  ;;  %v2063_v18 = vld [vmem:[%s3164_s0 + $0x5e0] sm:$0xff] }
 0x137   :  { %v1691_v25 = vmax.f32 %v1642_v23, 0.0  ;;  %1811 = vmatmul.msk.f32.gmra.mxu0 %vm73_vm1, %v60_v21  ;;  %1910 = vmatmul.msk.f32.gmra.mxu1 %vm73_vm1, %v1860_v22  ;;  %v65_v23 = vld [vmem:[%s3164_s0 + $0x148] sm:$0xff] }
 0x138   :  { %v1073_v26 = vpop.f32.mrf.mxu2  ;;  %v1483_v27 = vpop.f32.mrf.mxu3 }
 0x139   :  { %1740 = vst [vmem:[%s3166_s3 + $0x98] sm:$0xff] %v1691_v25  ;;  %v1180_v28 = vmax.f32 %v770_v24, %v1073_v26  ;;  %v1865_v24 = vld [vmem:[%s3164_s0 + $0x2d0] sm:$0xff] }
 0x13b   :  { %v1590_v31 = vmax.f32 %v1180_v28, %v1483_v27 }
 0x13c   :  { %v305_v32 = vpop.f32.mrf.mxu0  ;;  %v666_v33 = vpop.f32.mrf.mxu1 }
 0x13d   :  { %v1643_v36 = vadd.f32 %v2448_v20, %v1590_v31  ;;  %2010 = vmatmul.msk.f32.gmra.mxu2 %vm73_vm1, %v1960_v29  ;;  %v771_v37 = vmax.f32 %v305_v32, %v666_v33  ;;  %2109 = vmatmul.msk.f32.gmra.mxu3 %vm73_vm1, %v2059_v30  ;;  %v1965_v31 = vld [vmem:[%s3164_s0 + $0x460] sm:$0xff]  ;;  %v2064_v32 = vld [vmem:[%s3164_s0 + $0x5e8] sm:$0xff] }
 0x13f   :  { %v1692_v38 = vmax.f32 %v1643_v36, 0.0  ;;  %1812 = vmatmul.msk.f32.gmra.mxu0 %vm73_vm1, %v61_v34  ;;  %1911 = vmatmul.msk.f32.gmra.mxu1 %vm73_vm1, %v1861_v35  ;;  %v66_v36 = vld [vmem:[%s3164_s0 + $0x150] sm:$0xff] }
 0x140   :  { %v1076_v39 = vpop.f32.mrf.mxu2  ;;  %v1486_v40 = vpop.f32.mrf.mxu3 }
 0x141   :  { %1741 = vst [vmem:[%s3166_s3 + $0xa0] sm:$0xff] %v1692_v38  ;;  %v1181_v41 = vmax.f32 %v771_v37, %v1076_v39  ;;  %v1866_v37 = vld [vmem:[%s3164_s0 + $0x2d8] sm:$0xff] }
 0x143   :  { %v1591_v44 = vmax.f32 %v1181_v41, %v1486_v40 }
 0x144   :  { %v308_v45 = vpop.f32.mrf.mxu0  ;;  %v669_v46 = vpop.f32.mrf.mxu1 }
 0x145   :  { %v1644_v49 = vadd.f32 %v2448_v20, %v1591_v44  ;;  %2011 = vmatmul.msk.f32.gmra.mxu2 %vm73_vm1, %v1961_v42  ;;  %v772_v50 = vmax.f32 %v308_v45, %v669_v46  ;;  %2110 = vmatmul.msk.f32.gmra.mxu3 %vm73_vm1, %v2060_v43  ;;  %v1966_v44 = vld [vmem:[%s3164_s0 + $0x468] sm:$0xff]  ;;  %v2065_v45 = vld [vmem:[%s3164_s0 + $0x5f0] sm:$0xff] }
 0x147   :  { %v1693_v51 = vmax.f32 %v1644_v49, 0.0  ;;  %1813 = vmatmul.msk.f32.gmra.mxu0 %vm73_vm1, %v62_v47  ;;  %1912 = vmatmul.msk.f32.gmra.mxu1 %vm73_vm1, %v1862_v48  ;;  %v67_v49 = vld [vmem:[%s3164_s0 + $0x158] sm:$0xff] }
 0x148   :  { %v1079_v52 = vpop.f32.mrf.mxu2  ;;  %v1489_v53 = vpop.f32.mrf.mxu3 }
 0x149   :  { %1742 = vst [vmem:[%s3166_s3 + $0xa8] sm:$0xff] %v1693_v51  ;;  %v1182_v54 = vmax.f32 %v772_v50, %v1079_v52  ;;  %v1867_v50 = vld [vmem:[%s3164_s0 + $0x2e0] sm:$0xff] }
 0x14b   :  { %v1592_v57 = vmax.f32 %v1182_v54, %v1489_v53 }
 0x14c   :  { %v311_v58 = vpop.f32.mrf.mxu0  ;;  %v672_v59 = vpop.f32.mrf.mxu1 }
 0x14d   :  { %v1645_v62 = vadd.f32 %v2448_v20, %v1592_v57  ;;  %2012 = vmatmul.msk.f32.gmra.mxu2 %vm73_vm1, %v1962_v55  ;;  %v773_v63 = vmax.f32 %v311_v58, %v672_v59  ;;  %2111 = vmatmul.msk.f32.gmra.mxu3 %vm73_vm1, %v2061_v56  ;;  %v1967_v57 = vld [vmem:[%s3164_s0 + $0x470] sm:$0xff]  ;;  %v2066_v58 = vld [vmem:[%s3164_s0 + $0x5f8] sm:$0xff] }
 0x14f   :  { %v1694_v0 = vmax.f32 %v1645_v62, 0.0  ;;  %1814 = vmatmul.msk.f32.gmra.mxu0 %vm73_vm1, %v63_v60  ;;  %1913 = vmatmul.msk.f32.gmra.mxu1 %vm73_vm1, %v1863_v61  ;;  %v68_v62 = vld [vmem:[%s3164_s0 + $0x160] sm:$0xff] }
 0x150   :  { %v1082_v1 = vpop.f32.mrf.mxu2  ;;  %v1492_v2 = vpop.f32.mrf.mxu3 }
 0x151   :  { %1743 = vst [vmem:[%s3166_s3 + $0xb0] sm:$0xff] %v1694_v0  ;;  %v1183_v3 = vmax.f32 %v773_v63, %v1082_v1  ;;  %v1868_v63 = vld [vmem:[%s3164_s0 + $0x2e8] sm:$0xff] }
 0x153   :  { %v1593_v6 = vmax.f32 %v1183_v3, %v1492_v2 }
 0x154   :  { %v314_v7 = vpop.f32.mrf.mxu0  ;;  %v675_v8 = vpop.f32.mrf.mxu1 }
 0x155   :  { %v1646_v11 = vadd.f32 %v2448_v20, %v1593_v6  ;;  %2013 = vmatmul.msk.f32.gmra.mxu2 %vm73_vm1, %v1963_v4  ;;  %v774_v12 = vmax.f32 %v314_v7, %v675_v8  ;;  %2112 = vmatmul.msk.f32.gmra.mxu3 %vm73_vm1, %v2062_v5  ;;  %v2067_v6 = vld [vmem:[%s3164_s0 + $0x600] sm:$0xff] }
 0x157   :  { %v1695_v13 = vmax.f32 %v1646_v11, 0.0  ;;  %1815 = vmatmul.msk.f32.gmra.mxu0 %vm73_vm1, %v64_v9  ;;  %1914 = vmatmul.msk.f32.gmra.mxu1 %vm73_vm1, %v1864_v10  ;;  %v69_v10 = vld [vmem:[%s3164_s0 + $0x168] sm:$0xff]  ;;  %v1869_v11 = vld [vmem:[%s3164_s0 + $0x2f0] sm:$0xff] }
 0x158   :  { %v1085_v14 = vpop.f32.mrf.mxu2  ;;  %v1495_v15 = vpop.f32.mrf.mxu3 }
 0x159   :  { %1744 = vst [vmem:[%s3166_s3 + $0xb8] sm:$0xff] %v1695_v13  ;;  %v1184_v16 = vmax.f32 %v774_v12, %v1085_v14  ;;  %v3025_v12 = vld [vmem:[%s3165_s2] ss:$0 sm:$0xff] }
 0x15b   :  { %v1594_v19 = vmax.f32 %v1184_v16, %v1495_v15 }
 0x15c   :  { %v317_v21 = vpop.f32.mrf.mxu0  ;;  %v678_v22 = vpop.f32.mrf.mxu1 }
 0x15d   :  { %v1647_v25 = vadd.f32 %v2448_v20, %v1594_v19  ;;  %2014 = vmatmul.msk.f32.gmra.mxu2 %vm73_vm1, %v1964_v17  ;;  %v775_v26 = vmax.f32 %v317_v21, %v678_v22  ;;  %2113 = vmatmul.msk.f32.gmra.mxu3 %vm73_vm1, %v2063_v18  ;;  %v1969_v19 = vld [vmem:[%s3164_s0 + $0x480] sm:$0xff]  ;;  %v2068_v21 = vld [vmem:[%s3164_s0 + $0x608] sm:$0xff] }
 0x15f   :  { %v1696_v27 = vmax.f32 %v1647_v25, 0.0  ;;  %1816 = vmatmul.msk.f32.gmra.mxu0 %vm73_vm1, %v65_v23  ;;  %1915 = vmatmul.msk.f32.gmra.mxu1 %vm73_vm1, %v1865_v24  ;;  %v70_v25 = vld [vmem:[%s3164_s0 + $0x170] sm:$0xff] }
 0x160   :  { %v1088_v28 = vpop.f32.mrf.mxu2  ;;  %v1498_v29 = vpop.f32.mrf.mxu3 }
 0x161   :  { %1745 = vst [vmem:[%s3166_s3 + $0xc0] sm:$0xff] %v1696_v27  ;;  %v1185_v30 = vmax.f32 %v775_v26, %v1088_v28  ;;  %v1870_v26 = vld [vmem:[%s3164_s0 + $0x2f8] sm:$0xff] }
 0x163   :  { %v1595_v33 = vmax.f32 %v1185_v30, %v1498_v29 }
 0x164   :  { %v320_v34 = vpop.f32.mrf.mxu0  ;;  %v681_v35 = vpop.f32.mrf.mxu1 }
 0x165   :  { %v1648_v38 = vadd.f32 %v2448_v20, %v1595_v33  ;;  %2015 = vmatmul.msk.f32.gmra.mxu2 %vm73_vm1, %v1965_v31  ;;  %v776_v39 = vmax.f32 %v320_v34, %v681_v35  ;;  %2114 = vmatmul.msk.f32.gmra.mxu3 %vm73_vm1, %v2064_v32  ;;  %v1970_v33 = vld [vmem:[%s3164_s0 + $0x488] sm:$0xff]  ;;  %v2069_v34 = vld [vmem:[%s3164_s0 + $0x610] sm:$0xff] }
 0x167   :  { %v1697_v40 = vmax.f32 %v1648_v38, 0.0  ;;  %1817 = vmatmul.msk.f32.gmra.mxu0 %vm73_vm1, %v66_v36  ;;  %1916 = vmatmul.msk.f32.gmra.mxu1 %vm73_vm1, %v1866_v37  ;;  %v71_v38 = vld [vmem:[%s3164_s0 + $0x178] sm:$0xff] }
 0x168   :  { %v1091_v41 = vpop.f32.mrf.mxu2  ;;  %v1501_v42 = vpop.f32.mrf.mxu3 }
 0x169   :  { %1746 = vst [vmem:[%s3166_s3 + $0xc8] sm:$0xff] %v1697_v40  ;;  %v1186_v43 = vmax.f32 %v776_v39, %v1091_v41  ;;  %v1871_v39 = vld [vmem:[%s3164_s0 + $0x300] sm:$0xff] }
 0x16b   :  { %v1596_v46 = vmax.f32 %v1186_v43, %v1501_v42 }
 0x16c   :  { %v323_v47 = vpop.f32.mrf.mxu0  ;;  %v684_v48 = vpop.f32.mrf.mxu1 }
 0x16d   :  { %v1649_v51 = vadd.f32 %v2448_v20, %v1596_v46  ;;  %2016 = vmatmul.msk.f32.gmra.mxu2 %vm73_vm1, %v1966_v44  ;;  %v777_v52 = vmax.f32 %v323_v47, %v684_v48  ;;  %2115 = vmatmul.msk.f32.gmra.mxu3 %vm73_vm1, %v2065_v45  ;;  %v1971_v46 = vld [vmem:[%s3164_s0 + $0x490] sm:$0xff]  ;;  %v2070_v47 = vld [vmem:[%s3164_s0 + $0x618] sm:$0xff] }
 0x16f   :  { %v1698_v53 = vmax.f32 %v1649_v51, 0.0  ;;  %1818 = vmatmul.msk.f32.gmra.mxu0 %vm73_vm1, %v67_v49  ;;  %1917 = vmatmul.msk.f32.gmra.mxu1 %vm73_vm1, %v1867_v50  ;;  %v72_v51 = vld [vmem:[%s3164_s0 + $0x180] sm:$0xff] }
 0x170   :  { %v1094_v54 = vpop.f32.mrf.mxu2  ;;  %v1504_v55 = vpop.f32.mrf.mxu3 }
 0x171   :  { %1747 = vst [vmem:[%s3166_s3 + $0xd0] sm:$0xff] %v1698_v53  ;;  %v1187_v56 = vmax.f32 %v777_v52, %v1094_v54  ;;  %v1872_v52 = vld [vmem:[%s3164_s0 + $0x308] sm:$0xff] }
 0x173   :  { %v1597_v59 = vmax.f32 %v1187_v56, %v1504_v55 }
 0x174   :  { %v326_v60 = vpop.f32.mrf.mxu0  ;;  %v687_v61 = vpop.f32.mrf.mxu1 }
 0x175   :  { %v1650_v0 = vadd.f32 %v2448_v20, %v1597_v59  ;;  %2017 = vmatmul.msk.f32.gmra.mxu2 %vm73_vm1, %v1967_v57  ;;  %v778_v1 = vmax.f32 %v326_v60, %v687_v61  ;;  %2116 = vmatmul.msk.f32.gmra.mxu3 %vm73_vm1, %v2066_v58  ;;  %v1968_v20 = vld [vmem:[%s3164_s0 + $0x478] sm:$0xff] }
 0x177   :  { %v1699_v2 = vmax.f32 %v1650_v0, 0.0  ;;  %1819 = vmatmul.msk.f32.gmra.mxu0 %vm73_vm1, %v68_v62  ;;  %1918 = vmatmul.msk.f32.gmra.mxu1 %vm73_vm1, %v1868_v63 }
 0x178   :  { %v1097_v3 = vpop.f32.mrf.mxu2  ;;  %v1507_v4 = vpop.f32.mrf.mxu3 }
 0x179   :  { %1748 = vst [vmem:[%s3166_s3 + $0xd8] sm:$0xff] %v1699_v2  ;;  %v1188_v5 = vmax.f32 %v778_v1, %v1097_v3 }
 0x17b   :  { %v1598_v7 = vmax.f32 %v1188_v5, %v1507_v4 }
 0x17c   :  { %v329_v8 = vpop.f32.mrf.mxu0  ;;  %v690_v9 = vpop.f32.mrf.mxu1 }
 0x17d   :  { %v1651_v13 = vadd.f32 %v3025_v12, %v1598_v7  ;;  %2018 = vmatmul.msk.f32.gmra.mxu2 %vm73_vm1, %v1968_v20  ;;  %v779_v14 = vmax.f32 %v329_v8, %v690_v9  ;;  %2117 = vmatmul.msk.f32.gmra.mxu3 %vm73_vm1, %v2067_v6 }
 0x17f   :  { %v1700_v15 = vmax.f32 %v1651_v13, 0.0  ;;  %1820 = vmatmul.msk.f32.gmra.mxu0 %vm73_vm1, %v69_v10  ;;  %1919 = vmatmul.msk.f32.gmra.mxu1 %vm73_vm1, %v1869_v11 }
 0x180   :  { %v1100_v16 = vpop.f32.mrf.mxu2  ;;  %v1510_v17 = vpop.f32.mrf.mxu3 }
 0x181   :  { %1749 = vst [vmem:[%s3166_s3 + $0xe0] sm:$0xff] %v1700_v15  ;;  %v1189_v18 = vmax.f32 %v779_v14, %v1100_v16 }
 0x183   :  { %v1599_v22 = vmax.f32 %v1189_v18, %v1510_v17 }
 0x184   :  { %v332_v23 = vpop.f32.mrf.mxu0  ;;  %v693_v24 = vpop.f32.mrf.mxu1 }
 0x185   :  { %v1652_v27 = vadd.f32 %v3025_v12, %v1599_v22  ;;  %2019 = vmatmul.msk.f32.gmra.mxu2 %vm73_vm1, %v1969_v19  ;;  %v780_v28 = vmax.f32 %v332_v23, %v693_v24  ;;  %2118 = vmatmul.msk.f32.gmra.mxu3 %vm73_vm1, %v2068_v21 }
 0x187   :  { %v1701_v29 = vmax.f32 %v1652_v27, 0.0  ;;  %1821 = vmatmul.msk.f32.gmra.mxu0 %vm73_vm1, %v70_v25  ;;  %1920 = vmatmul.msk.f32.gmra.mxu1 %vm73_vm1, %v1870_v26 }
 0x188   :  { %v1103_v30 = vpop.f32.mrf.mxu2  ;;  %v1513_v31 = vpop.f32.mrf.mxu3 }
 0x189   :  { %1750 = vst [vmem:[%s3166_s3 + $0xe8] sm:$0xff] %v1701_v29  ;;  %v1190_v32 = vmax.f32 %v780_v28, %v1103_v30 }
 0x18b   :  { %v1600_v35 = vmax.f32 %v1190_v32, %v1513_v31 }
 0x18c   :  { %v335_v36 = vpop.f32.mrf.mxu0  ;;  %v696_v37 = vpop.f32.mrf.mxu1 }
 0x18d   :  { %v1653_v40 = vadd.f32 %v3025_v12, %v1600_v35  ;;  %2020 = vmatmul.msk.f32.gmra.mxu2 %vm73_vm1, %v1970_v33  ;;  %v781_v41 = vmax.f32 %v335_v36, %v696_v37  ;;  %2119 = vmatmul.msk.f32.gmra.mxu3 %vm73_vm1, %v2069_v34 }
 0x18f   :  { %v1702_v42 = vmax.f32 %v1653_v40, 0.0  ;;  %1822 = vmatmul.msk.f32.gmra.mxu0 %vm73_vm1, %v71_v38  ;;  %1921 = vmatmul.msk.f32.gmra.mxu1 %vm73_vm1, %v1871_v39 }
 0x190   :  { %v1106_v43 = vpop.f32.mrf.mxu2  ;;  %v1516_v44 = vpop.f32.mrf.mxu3 }
 0x191   :  { %1751 = vst [vmem:[%s3166_s3 + $0xf0] sm:$0xff] %v1702_v42  ;;  %v1191_v45 = vmax.f32 %v781_v41, %v1106_v43 }
 0x193   :  { %v1601_v48 = vmax.f32 %v1191_v45, %v1516_v44 }
 0x194   :  { %v338_v49 = vpop.f32.mrf.mxu0  ;;  %v699_v50 = vpop.f32.mrf.mxu1 }
 0x195   :  { %v1654_v53 = vadd.f32 %v3025_v12, %v1601_v48  ;;  %2021 = vmatmul.msk.f32.gmra.mxu2 %vm73_vm1, %v1971_v46  ;;  %v782_v54 = vmax.f32 %v338_v49, %v699_v50  ;;  %2120 = vmatmul.msk.f32.gmra.mxu3 %vm73_vm1, %v2070_v47 }
 0x197   :  { %v1703_v55 = vmax.f32 %v1654_v53, 0.0  ;;  %1823 = vmatmul.msk.f32.gmra.mxu0 %vm73_vm1, %v72_v51  ;;  %1922 = vmatmul.msk.f32.gmra.mxu1 %vm73_vm1, %v1872_v52 }
 0x198   :  { %v1109_v56 = vpop.f32.mrf.mxu2  ;;  %v1519_v57 = vpop.f32.mrf.mxu3 }
 0x199   :  { %1752 = vst [vmem:[%s3166_s3 + $0xf8] sm:$0xff] %v1703_v55  ;;  %v1192_v58 = vmax.f32 %v782_v54, %v1109_v56 }
 0x19b   :  { %v1602_v59 = vmax.f32 %v1192_v58, %v1519_v57 }
 0x19c   :  { %v341_v60 = vpop.f32.mrf.mxu0  ;;  %v702_v61 = vpop.f32.mrf.mxu1 }
 0x19d   :  { %v1655_v62 = vadd.f32 %v3025_v12, %v1602_v59  ;;  %v783_v63 = vmax.f32 %v341_v60, %v702_v61 }
 0x19f   :  { %v1704_v0 = vmax.f32 %v1655_v62, 0.0 }
 0x1a0   :  { %v1112_v1 = vpop.f32.mrf.mxu2  ;;  %v1522_v2 = vpop.f32.mrf.mxu3 }
 0x1a1   :  { %1753 = vst [vmem:[%s3166_s3 + $0x100] sm:$0xff] %v1704_v0  ;;  %v1193_v3 = vmax.f32 %v783_v63, %v1112_v1 }
 0x1a3   :  { %v1603_v4 = vmax.f32 %v1193_v3, %v1522_v2 }
 0x1a4   :  { %v344_v5 = vpop.f32.mrf.mxu0  ;;  %v705_v20 = vpop.f32.mrf.mxu1 }
 0x1a5   :  { %v1656_v6 = vadd.f32 %v3025_v12, %v1603_v4  ;;  %v784_v7 = vmax.f32 %v344_v5, %v705_v20 }
 0x1a7   :  { %v1705_v8 = vmax.f32 %v1656_v6, 0.0 }
 0x1a8   :  { %v1115_v9 = vpop.f32.mrf.mxu2  ;;  %v1525_v10 = vpop.f32.mrf.mxu3 }
 0x1a9   :  { %1754 = vst [vmem:[%s3166_s3 + $0x108] sm:$0xff] %v1705_v8  ;;  %v1194_v11 = vmax.f32 %v784_v7, %v1115_v9 }
 0x1ab   :  { %v1604_v13 = vmax.f32 %v1194_v11, %v1525_v10 }
 0x1ac   :  { %v347_v14 = vpop.f32.mrf.mxu0  ;;  %v708_v15 = vpop.f32.mrf.mxu1 }
 0x1ad   :  { %v1657_v16 = vadd.f32 %v3025_v12, %v1604_v13  ;;  %v785_v17 = vmax.f32 %v347_v14, %v708_v15 }
 0x1af   :  { %v1706_v18 = vmax.f32 %v1657_v16, 0.0 }
 0x1b0   :  { %v1118_v19 = vpop.f32.mrf.mxu2  ;;  %v1528_v21 = vpop.f32.mrf.mxu3 }
 0x1b1   :  { %1755 = vst [vmem:[%s3166_s3 + $0x110] sm:$0xff] %v1706_v18  ;;  %v1195_v22 = vmax.f32 %v785_v17, %v1118_v19 }
 0x1b3   :  { %v1605_v23 = vmax.f32 %v1195_v22, %v1528_v21 }
 0x1b4   :  { %v350_v24 = vpop.f32.mrf.mxu0  ;;  %v711_v25 = vpop.f32.mrf.mxu1 }
 0x1b5   :  { %v1658_v26 = vadd.f32 %v3025_v12, %v1605_v23  ;;  %v786_v27 = vmax.f32 %v350_v24, %v711_v25 }
 0x1b7   :  { %v1707_v28 = vmax.f32 %v1658_v26, 0.0 }
 0x1b8   :  { %v1121_v29 = vpop.f32.mrf.mxu2  ;;  %v1531_v30 = vpop.f32.mrf.mxu3 }
 0x1b9   :  { %1756 = vst [vmem:[%s3166_s3 + $0x118] sm:$0xff] %v1707_v28  ;;  %v1196_v31 = vmax.f32 %v786_v27, %v1121_v29 }
 0x1bb   :  { %v1606_v32 = vmax.f32 %v1196_v31, %v1531_v30 }
 0x1bc   :  { %v353_v33 = vpop.f32.mrf.mxu0  ;;  %v714_v34 = vpop.f32.mrf.mxu1 }
 0x1bd   :  { %v1659_v35 = vadd.f32 %v3025_v12, %v1606_v32  ;;  %v787_v36 = vmax.f32 %v353_v33, %v714_v34 }
 0x1bf   :  { %v1708_v37 = vmax.f32 %v1659_v35, 0.0 }
 0x1c0   :  { %v1124_v38 = vpop.f32.mrf.mxu2  ;;  %v1534_v39 = vpop.f32.mrf.mxu3 }
 0x1c1   :  { %1757 = vst [vmem:[%s3166_s3 + $0x120] sm:$0xff] %v1708_v37  ;;  %v1197_v40 = vmax.f32 %v787_v36, %v1124_v38 }
 0x1c3   :  { %v1607_v41 = vmax.f32 %v1197_v40, %v1534_v39 }
 0x1c4   :  { %v356_v42 = vpop.f32.mrf.mxu0  ;;  %v717_v43 = vpop.f32.mrf.mxu1 }
 0x1c5   :  { %v1660_v44 = vadd.f32 %v3025_v12, %v1607_v41  ;;  %v788_v45 = vmax.f32 %v356_v42, %v717_v43 }
 0x1c7   :  { %v1709_v46 = vmax.f32 %v1660_v44, 0.0 }
 0x1c8   :  { %v1127_v47 = vpop.f32.mrf.mxu2  ;;  %v1537_v48 = vpop.f32.mrf.mxu3 }
 0x1c9   :  { %1758 = vst [vmem:[%s3166_s3 + $0x128] sm:$0xff] %v1709_v46  ;;  %v1198_v49 = vmax.f32 %v788_v45, %v1127_v47 }
 0x1cb   :  { %v1608_v50 = vmax.f32 %v1198_v49, %v1537_v48 }
 0x1cc   :  { %v359_v51 = vpop.f32.mrf.mxu0  ;;  %v720_v52 = vpop.f32.mrf.mxu1 }
 0x1cd   :  { %v1661_v53 = vadd.f32 %v3025_v12, %v1608_v50  ;;  %v789_v54 = vmax.f32 %v359_v51, %v720_v52 }
 0x1cf   :  { %v1710_v55 = vmax.f32 %v1661_v53, 0.0 }
 0x1d0   :  { %v1130_v56 = vpop.f32.mrf.mxu2  ;;  %v1540_v57 = vpop.f32.mrf.mxu3 }
 0x1d1   :  { %1759 = vst [vmem:[%s3166_s3 + $0x130] sm:$0xff] %v1710_v55  ;;  %v1199_v58 = vmax.f32 %v789_v54, %v1130_v56 }
 0x1d3   :  { %v1609_v59 = vmax.f32 %v1199_v58, %v1540_v57 }
 0x1d4   :  { %v362_v60 = vpop.f32.mrf.mxu0  ;;  %v723_v61 = vpop.f32.mrf.mxu1 }
 0x1d5   :  { %v1662_v62 = vadd.f32 %v3025_v12, %v1609_v59  ;;  %v790_v63 = vmax.f32 %v362_v60, %v723_v61 }
 0x1d7   :  { %v1711_v0 = vmax.f32 %v1662_v62, 0.0 }
 0x1d8   :  { %v1133_v1 = vpop.f32.mrf.mxu2  ;;  %v1543_v2 = vpop.f32.mrf.mxu3 }
 0x1d9   :  { %1760 = vst [vmem:[%s3166_s3 + $0x138] sm:$0xff] %v1711_v0  ;;  %v1200_v3 = vmax.f32 %v790_v63, %v1133_v1 }
 0x1db   :  { %v1610_v4 = vmax.f32 %v1200_v3, %v1543_v2 }
 0x1dc   :  { %v365_v5 = vpop.f32.mrf.mxu0  ;;  %v726_v20 = vpop.f32.mrf.mxu1 }
 0x1dd   :  { %v1663_v6 = vadd.f32 %v3025_v12, %v1610_v4  ;;  %v791_v7 = vmax.f32 %v365_v5, %v726_v20 }
 0x1df   :  { %v1712_v8 = vmax.f32 %v1663_v6, 0.0 }
 0x1e0   :  { %v1136_v9 = vpop.f32.mrf.mxu2  ;;  %v1546_v10 = vpop.f32.mrf.mxu3 }
 0x1e1   :  { %1761 = vst [vmem:[%s3166_s3 + $0x140] sm:$0xff] %v1712_v8  ;;  %v1201_v11 = vmax.f32 %v791_v7, %v1136_v9 }
 0x1e3   :  { %v1611_v13 = vmax.f32 %v1201_v11, %v1546_v10 }
 0x1e4   :  { %v368_v14 = vpop.f32.mrf.mxu0  ;;  %v729_v15 = vpop.f32.mrf.mxu1 }
 0x1e5   :  { %v1664_v16 = vadd.f32 %v3025_v12, %v1611_v13  ;;  %v792_v17 = vmax.f32 %v368_v14, %v729_v15 }
 0x1e7   :  { %v1713_v18 = vmax.f32 %v1664_v16, 0.0 }
 0x1e8   :  { %v1139_v19 = vpop.f32.mrf.mxu2  ;;  %v1549_v21 = vpop.f32.mrf.mxu3 }
 0x1e9   :  { %1762 = vst [vmem:[%s3166_s3 + $0x148] sm:$0xff] %v1713_v18  ;;  %v1202_v22 = vmax.f32 %v792_v17, %v1139_v19 }
 0x1eb   :  { %v1612_v23 = vmax.f32 %v1202_v22, %v1549_v21 }
 0x1ec   :  { %v371_v24 = vpop.f32.mrf.mxu0  ;;  %v732_v25 = vpop.f32.mrf.mxu1 }
 0x1ed   :  { %v1665_v26 = vadd.f32 %v3025_v12, %v1612_v23  ;;  %v793_v27 = vmax.f32 %v371_v24, %v732_v25 }
 0x1ef   :  { %v1714_v28 = vmax.f32 %v1665_v26, 0.0 }
 0x1f0   :  { %v1142_v29 = vpop.f32.mrf.mxu2  ;;  %v1552_v30 = vpop.f32.mrf.mxu3 }
 0x1f1   :  { %1763 = vst [vmem:[%s3166_s3 + $0x150] sm:$0xff] %v1714_v28  ;;  %v1203_v31 = vmax.f32 %v793_v27, %v1142_v29 }
 0x1f3   :  { %v1613_v32 = vmax.f32 %v1203_v31, %v1552_v30 }
 0x1f4   :  { %v374_v33 = vpop.f32.mrf.mxu0  ;;  %v735_v34 = vpop.f32.mrf.mxu1 }
 0x1f5   :  { %v1666_v35 = vadd.f32 %v3025_v12, %v1613_v32  ;;  %v794_v36 = vmax.f32 %v374_v33, %v735_v34 }
 0x1f7   :  { %v1715_v37 = vmax.f32 %v1666_v35, 0.0 }
 0x1f8   :  { %v1145_v38 = vpop.f32.mrf.mxu2  ;;  %v1555_v39 = vpop.f32.mrf.mxu3 }
 0x1f9   :  { %1764 = vst [vmem:[%s3166_s3 + $0x158] sm:$0xff] %v1715_v37  ;;  %v1204_v40 = vmax.f32 %v794_v36, %v1145_v38 }
 0x1fb   :  { %v1614_v41 = vmax.f32 %v1204_v40, %v1555_v39 }
 0x1fc   :  { %v377_v42 = vpop.f32.mrf.mxu0  ;;  %v738_v43 = vpop.f32.mrf.mxu1 }
 0x1fd   :  { %v1667_v44 = vadd.f32 %v3025_v12, %v1614_v41  ;;  %v795_v45 = vmax.f32 %v377_v42, %v738_v43 }
 0x1ff   :  { %v1716_v46 = vmax.f32 %v1667_v44, 0.0 }
 0x200   :  { %v1148_v47 = vpop.f32.mrf.mxu2  ;;  %v1558_v48 = vpop.f32.mrf.mxu3 }
 0x201   :  { %1765 = vst [vmem:[%s3166_s3 + $0x160] sm:$0xff] %v1716_v46  ;;  %v1205_v49 = vmax.f32 %v795_v45, %v1148_v47 }
 0x203   :  { %v1615_v50 = vmax.f32 %v1205_v49, %v1558_v48 }
 0x204   :  { %v380_v51 = vpop.f32.mrf.mxu0  ;;  %v741_v52 = vpop.f32.mrf.mxu1 }
 0x205   :  { %v1668_v53 = vadd.f32 %v3025_v12, %v1615_v50  ;;  %v796_v54 = vmax.f32 %v380_v51, %v741_v52 }
 0x207   :  { %v1717_v55 = vmax.f32 %v1668_v53, 0.0 }
 0x208   :  { %v1151_v56 = vpop.f32.mrf.mxu2  ;;  %v1561_v57 = vpop.f32.mrf.mxu3 }
 0x209   :  { %1766 = vst [vmem:[%s3166_s3 + $0x168] sm:$0xff] %v1717_v55  ;;  %v1206_v58 = vmax.f32 %v796_v54, %v1151_v56 }
 0x20b   :  { %v1616_v59 = vmax.f32 %v1206_v58, %v1561_v57 }
 0x20c   :  { %v383_v60 = vpop.f32.mrf.mxu0  ;;  %v744_v61 = vpop.f32.mrf.mxu1 }
 0x20d   :  { %v1669_v62 = vadd.f32 %v3025_v12, %v1616_v59  ;;  %v797_v63 = vmax.f32 %v383_v60, %v744_v61 }
 0x20f   :  { %v1718_v0 = vmax.f32 %v1669_v62, 0.0 }
 0x210   :  { %v1154_v1 = vpop.f32.mrf.mxu2  ;;  %v1564_v2 = vpop.f32.mrf.mxu3 }
 0x211   :  { %1767 = vst [vmem:[%s3166_s3 + $0x170] sm:$0xff] %v1718_v0  ;;  %v1207_v3 = vmax.f32 %v797_v63, %v1154_v1 }
 0x213   :  { %v1617_v4 = vmax.f32 %v1207_v3, %v1564_v2 }
 0x214   :  { %v386_v5 = vpop.f32.mrf.mxu0  ;;  %v747_v20 = vpop.f32.mrf.mxu1 }
 0x215   :  { %v1670_v6 = vadd.f32 %v3025_v12, %v1617_v4  ;;  %v798_v7 = vmax.f32 %v386_v5, %v747_v20 }
 0x217   :  { %v1719_v8 = vmax.f32 %v1670_v6, 0.0 }
 0x218   :  { %v1157_v9 = vpop.f32.mrf.mxu2  ;;  %v1567_v10 = vpop.f32.mrf.mxu3 }
 0x219   :  { %1768 = vst [vmem:[%s3166_s3 + $0x178] sm:$0xff] %v1719_v8  ;;  %v1208_v11 = vmax.f32 %v798_v7, %v1157_v9 }
 0x21b   :  { %v1618_v13 = vmax.f32 %v1208_v11, %v1567_v10 }
 0x21d   :  { %v1671_v14 = vadd.f32 %v3025_v12, %v1618_v13 }
 0x21f   :  { %v1720_v15 = vmax.f32 %v1671_v14, 0.0 }
 0x221   :  { %1769 = vst [vmem:[%s3166_s3 + $0x180] sm:$0xff] %v1720_v15 }

// kernel: lenet_forward_pallas.4
= control target key start
LH: loop header
LB: loop body
LE: loop exit
PB: predicated region body
PF: predicated region fallthrough
CT: control target
= control target key end

     0   :  { %vm69_vm0 = vcmask 1045504   ;;  %vm47_vm1 = vcmask 179200   ;;  %s1094_s1 = inlined_call_operand.vmem [shape: f32[150,128], index: 1, kind: input, shape index: {}]   ;;  %s1095_s0 = inlined_call_operand.vmem [shape: f32[1,4,50,150], index: 0, kind: input, shape index: {}]   ;;  %s1096_s2 = inlined_call_operand.vmem [shape: f32[1,128], index: 2, kind: input, shape index: {}]   ;;  %s1097_s3 = inlined_call_operand.vmem [shape: f32[1,50,128], index: 3, kind: output, shape index: {}]  }
   0x1   :  { %v652_v0 = vld [vmem:[%s1094_s1 + $0x78] sm:$0xff]  ;;  %v657_v1 = vld [vmem:[%s1094_s1 + $0x90] sm:$0x3f]  ;;  %v669_v3 = vld [vmem:[%s1094_s1 + $0x88] sm:$0xff] }
   0x2   :  { %v662_v2 = vld [vmem:[%s1094_s1 + $0x70] sm:$0xff]  ;;  %73 = vmatpush.msra.mxu0 %v652_v0  ;;  %185 = vmatpush.msra.mxu2 %v652_v0  ;;  %v676_v4 = vld [vmem:[%s1094_s1 + $0x68] sm:$0xff]  ;;  %v685_v5 = vld [vmem:[%s1094_s1 + $0x80] sm:$0xff] }
   0x3   :  { %557 = vmatpush.msk.msra.mxu3 %vm69_vm0, %v657_v1  ;;  %535 = vmatpush.msk.msra.mxu1 %vm69_vm0, %v657_v1  ;;  %v544_v6 = vld [vmem:[%s1095_s0 + $0x78] sm:$0xff]  ;;  %v694_v7 = vld [vmem:[%s1094_s1 + $0x60] sm:$0xff]  ;;  %v34_v8 = vld [vmem:[%s1095_s0 + $0x8] sm:$0xff] }
   0x4   :  { %74 = vmatpush.msra.mxu0 %v662_v2  ;;  %186 = vmatpush.msra.mxu2 %v662_v2  ;;  %v706_v9 = vld [vmem:[%s1094_s1 + $0x58] sm:$0xff]  ;;  %v715_v10 = vld [vmem:[%s1094_s1 + $0x50] sm:$0xff]  ;;  %v725_v11 = vld [vmem:[%s1094_s1 + $0x48] sm:$0xff] }
   0x5   :  { %237 = vmatpush.msra.mxu3 %v669_v3  ;;  %125 = vmatpush.msra.mxu1 %v669_v3  ;;  %v546_v12 = vld [vmem:[%s1095_s0 + $0x88] sm:$0xff]  ;;  %v737_v13 = vld [vmem:[%s1094_s1 + $0x40] sm:$0xff]  ;;  %v36_v14 = vld [vmem:[%s1095_s0 + $0x18] sm:$0xff] }
   0x6   :  { %75 = vmatpush.msra.mxu0 %v676_v4  ;;  %187 = vmatpush.msra.mxu2 %v676_v4  ;;  %v749_v15 = vld [vmem:[%s1094_s1 + $0x38] sm:$0xff]  ;;  %v758_v16 = vld [vmem:[%s1094_s1 + $0x30] sm:$0xff]  ;;  %v767_v17 = vld [vmem:[%s1094_s1 + $0x28] sm:$0xff] }
   0x7   :  { %238 = vmatpush.msra.mxu3 %v685_v5  ;;  %126 = vmatpush.msra.mxu1 %v685_v5  ;;  %v548_v18 = vld [vmem:[%s1095_s0 + $0x98] sm:$0xff]  ;;  %v780_v19 = vld [vmem:[%s1094_s1 + $0x20] sm:$0xff]  ;;  %v38_v20 = vld [vmem:[%s1095_s0 + $0x28] sm:$0xff] }
   0x8   :  { %558 = vmatmul.msk.f32.vlgmr.msra.gmra.mxu3 %vm47_vm1, %v544_v6  ;;  %76 = vmatpush.msra.mxu0 %v694_v7  ;;  %v792_v21 = vld [vmem:[%s1094_s1 + $0x18] sm:$0xff]  ;;  %v801_v22 = vld [vmem:[%s1094_s1 + $0x10] sm:$0xff]  ;;  %v810_v23 = vld [vmem:[%s1094_s1 + $0x8] sm:$0xff] }
   0x9   :  { %188 = vmatpush.msra.mxu2 %v694_v7  ;;  %536 = vmatmul.msk.f32.vlgmr.msra.gmra.mxu1 %vm47_vm1, %v34_v8  ;;  %v550_v24 = vld [vmem:[%s1095_s0 + $0xa8] sm:$0xff]  ;;  %v821_v25 = vld [vmem:[%s1094_s1] sm:$0xff]  ;;  %v543_v27 = vld [vmem:[%s1095_s0 + $0x70] sm:$0xff] }
   0xa   :  { %77 = vmatpush.msra.mxu0 %v706_v9  ;;  %579 = vmatpush.msk.msrb.mxu3 %vm69_vm0, %v657_v1  ;;  %v33_v26 = vld [vmem:[%s1095_s0] sm:$0xff]  ;;  %v40_v28 = vld [vmem:[%s1095_s0 + $0x38] sm:$0xff]  ;;  %v35_v30 = vld [vmem:[%s1095_s0 + $0x10] sm:$0xff] }
   0xb   :  { %189 = vmatpush.msra.mxu2 %v706_v9  ;;  %304 = vmatpush.msrb.mxu1 %v652_v0  ;;  %v552_v29 = vld [vmem:[%s1095_s0 + $0xb8] sm:$0xff]  ;;  %v545_v31 = vld [vmem:[%s1095_s0 + $0x80] sm:$0xff]  ;;  %v42_v32 = vld [vmem:[%s1095_s0 + $0x48] sm:$0xff] }
   0xc   :  { %78 = vmatpush.msra.mxu0 %v715_v10  ;;  %356 = vmatpush.msrb.mxu3 %v669_v3  ;;  %v554_v33 = vld [vmem:[%s1095_s0 + $0xc8] sm:$0xff]  ;;  %v37_v34 = vld [vmem:[%s1095_s0 + $0x20] sm:$0xff]  ;;  %v547_v35 = vld [vmem:[%s1095_s0 + $0x90] sm:$0xff] }
   0xd   :  { %190 = vmatpush.msra.mxu2 %v715_v10  ;;  %305 = vmatpush.msrb.mxu1 %v662_v2  ;;  %v44_v36 = vld [vmem:[%s1095_s0 + $0x58] sm:$0xff]  ;;  %v39_v38 = vld [vmem:[%s1095_s0 + $0x30] sm:$0xff]  ;;  %v549_v39 = vld [vmem:[%s1095_s0 + $0xa0] sm:$0xff] }
   0xe   :  { %79 = vmatpush.msra.mxu0 %v725_v11  ;;  %357 = vmatpush.msrb.mxu3 %v685_v5  ;;  %v556_v37 = vld [vmem:[%s1095_s0 + $0xd8] sm:$0x3]  ;;  %v46_v40 = vld [vmem:[%s1095_s0 + $0x68] sm:$0x3]  ;;  %v41_v42 = vld [vmem:[%s1095_s0 + $0x40] sm:$0xff] }
   0xf   :  { %191 = vmatpush.msra.mxu2 %v725_v11  ;;  %306 = vmatpush.msrb.mxu1 %v676_v4  ;;  %v566_v41 = vld [vmem:[%s1095_s0 + $0xe8] sm:$0xff]  ;;  %v551_v43 = vld [vmem:[%s1095_s0 + $0xb0] sm:$0xff]  ;;  %v565_v44 = vld [vmem:[%s1095_s0 + $0xe0] sm:$0xff] }
  0x10   :  { %559 = vmatmul.msk.f32.gmra.mxu3 %vm47_vm1, %v546_v12  ;;  %80 = vmatpush.msra.mxu0 %v737_v13  ;;  %v568_v45 = vld [vmem:[%s1095_s0 + $0xf8] sm:$0xff]  ;;  %v43_v46 = vld [vmem:[%s1095_s0 + $0x50] sm:$0xff]  ;;  %v553_v47 = vld [vmem:[%s1095_s0 + $0xc0] sm:$0xff] }
  0x11   :  { %192 = vmatpush.msra.mxu2 %v737_v13  ;;  %537 = vmatmul.msk.f32.gmra.mxu1 %vm47_vm1, %v36_v14  ;;  %v567_v48 = vld [vmem:[%s1095_s0 + $0xf0] sm:$0xff]  ;;  %v570_v49 = vld [vmem:[%s1095_s0 + $0x108] sm:$0xff]  ;;  %v45_v50 = vld [vmem:[%s1095_s0 + $0x60] sm:$0x3] }
  0x12   :  { %81 = vmatpush.msra.mxu0 %v749_v15  ;;  %307 = vmatpush.msrb.mxu1 %v694_v7  ;;  %v555_v51 = vld [vmem:[%s1095_s0 + $0xd0] sm:$0x3]  ;;  %v569_v52 = vld [vmem:[%s1095_s0 + $0x100] sm:$0xff]  ;;  %v572_v53 = vld [vmem:[%s1095_s0 + $0x118] sm:$0xff] }
  0x13   :  { %193 = vmatpush.msra.mxu2 %v749_v15  ;;  %625 = vmatpush.msk.msra.mxu3 %vm69_vm0, %v657_v1  ;;  %v587_v54 = vld [vmem:[%s1095_s0 + $0x150] sm:$0xff]  ;;  %v588_v55 = vld [vmem:[%s1095_s0 + $0x158] sm:$0xff]  ;;  %v574_v57 = vld [vmem:[%s1095_s0 + $0x128] sm:$0xff] }
  0x14   :  { %82 = vmatpush.msra.mxu0 %v758_v16  ;;  %308 = vmatpush.msrb.mxu1 %v706_v9  ;;  %v571_v56 = vld [vmem:[%s1095_s0 + $0x110] sm:$0xff]  ;;  %v589_v58 = vld [vmem:[%s1095_s0 + $0x160] sm:$0xff]  ;;  %v590_v59 = vld [vmem:[%s1095_s0 + $0x168] sm:$0xff] }
  0x15   :  { %194 = vmatpush.msra.mxu2 %v758_v16  ;;  %626 = vmatpush.msra.mxu3 %v669_v3  ;;  %v573_v60 = vld [vmem:[%s1095_s0 + $0x120] sm:$0xff]  ;;  %v576_v61 = vld [vmem:[%s1095_s0 + $0x138] sm:$0xff]  ;;  %v591_v62 = vld [vmem:[%s1095_s0 + $0x170] sm:$0xff] }
  0x16   :  { %83 = vmatpush.msra.mxu0 %v767_v17  ;;  %309 = vmatpush.msrb.mxu1 %v715_v10  ;;  %v592_v63 = vld [vmem:[%s1095_s0 + $0x178] sm:$0xff]  ;;  %v595_v6 = vld [vmem:[%s1095_s0 + $0x190] sm:$0xff] }
  0x17   :  { %195 = vmatpush.msra.mxu2 %v767_v17  ;;  %627 = vmatpush.msra.mxu3 %v685_v5  ;;  %v599_v8 = vld [vmem:[%s1095_s0 + $0x1b0] sm:$0x3] }
  0x18   :  { %560 = vmatmul.msk.f32.gmra.mxu3 %vm47_vm1, %v548_v18  ;;  %84 = vmatpush.msra.mxu0 %v780_v19 }
  0x19   :  { %196 = vmatpush.msra.mxu2 %v780_v19  ;;  %538 = vmatmul.msk.f32.gmra.mxu1 %vm47_vm1, %v38_v20 }
  0x1a   :  { %85 = vmatpush.msra.mxu0 %v792_v21  ;;  %310 = vmatpush.msrb.mxu1 %v725_v11 }
  0x1b   :  { %197 = vmatpush.msra.mxu2 %v792_v21 }
  0x1c   :  { %86 = vmatpush.msra.mxu0 %v801_v22  ;;  %311 = vmatpush.msrb.mxu1 %v737_v13 }
  0x1d   :  { %198 = vmatpush.msra.mxu2 %v801_v22 }
  0x1e   :  { %87 = vmatpush.msra.mxu0 %v810_v23  ;;  %312 = vmatpush.msrb.mxu1 %v749_v15 }
  0x1f   :  { %199 = vmatpush.msra.mxu2 %v810_v23 }
  0x20   :  { %561 = vmatmul.msk.f32.gmra.mxu3 %vm47_vm1, %v550_v24  ;;  %88 = vmatpush.msra.mxu0 %v821_v25 }
  0x21   :  { %200 = vmatpush.msra.mxu2 %v821_v25  ;;  %89 = vmatmul.f32.vlgmr.msra.gmra.mxu0 %v33_v26 }
  0x22   :  { %201 = vmatmul.f32.vlgmr.msra.gmra.mxu2 %v543_v27  ;;  %539 = vmatmul.msk.f32.gmra.mxu1 %vm47_vm1, %v40_v28 }
  0x23   :  { %601 = vmatpush.msk.msrb.mxu2 %vm69_vm0, %v657_v1  ;;  %423 = vmatpush.msrb.mxu0 %v652_v0  ;;  %v578_v1 = vld [vmem:[%s1095_s0 + $0x148] sm:$0x3] }
  0x24   :  { %313 = vmatpush.msrb.mxu1 %v758_v16 }
  0x25   :  { %424 = vmatpush.msrb.mxu0 %v662_v2  ;;  %475 = vmatpush.msrb.mxu2 %v669_v3  ;;  %v594_v3 = vld [vmem:[%s1095_s0 + $0x188] sm:$0xff] }
  0x26   :  { %314 = vmatpush.msrb.mxu1 %v767_v17 }
  0x27   :  { %425 = vmatpush.msrb.mxu0 %v676_v4  ;;  %476 = vmatpush.msrb.mxu2 %v685_v5  ;;  %v600_v5 = vld [vmem:[%s1095_s0 + $0x1b8] sm:$0x3] }
  0x28   :  { %562 = vmatmul.msk.f32.gmra.mxu3 %vm47_vm1, %v552_v29  ;;  %315 = vmatpush.msrb.mxu1 %v780_v19 }
  0x29   :  { %92 = vmatmul.f32.gmra.mxu0 %v35_v30 }
  0x2a   :  { %204 = vmatmul.f32.gmra.mxu2 %v545_v31  ;;  %540 = vmatmul.msk.f32.gmra.mxu1 %vm47_vm1, %v42_v32 }
  0x2b   :  { %426 = vmatpush.msrb.mxu0 %v694_v7  ;;  %316 = vmatpush.msrb.mxu1 %v792_v21 }
  0x2d   :  { %427 = vmatpush.msrb.mxu0 %v706_v9  ;;  %317 = vmatpush.msrb.mxu1 %v801_v22 }
  0x2f   :  { %428 = vmatpush.msrb.mxu0 %v715_v10  ;;  %318 = vmatpush.msrb.mxu1 %v810_v23 }
  0x30   :  { %563 = vmatmul.msk.f32.gmra.mxu3 %vm47_vm1, %v554_v33 }
  0x31   :  { %95 = vmatmul.f32.gmra.mxu0 %v37_v34  ;;  %319 = vmatpush.msrb.mxu1 %v821_v25 }
  0x32   :  { %207 = vmatmul.f32.gmra.mxu2 %v547_v35  ;;  %541 = vmatmul.msk.f32.gmra.mxu1 %vm47_vm1, %v44_v36 }
  0x33   :  { %429 = vmatpush.msrb.mxu0 %v725_v11  ;;  %609 = vmatpush.msra.mxu1 %v652_v0  ;;  %v575_v0 = vld [vmem:[%s1095_s0 + $0x130] sm:$0xff] }
  0x35   :  { %430 = vmatpush.msrb.mxu0 %v737_v13  ;;  %610 = vmatpush.msra.mxu1 %v662_v2  ;;  %v593_v2 = vld [vmem:[%s1095_s0 + $0x180] sm:$0xff] }
  0x37   :  { %431 = vmatpush.msrb.mxu0 %v749_v15  ;;  %611 = vmatpush.msra.mxu1 %v676_v4  ;;  %v577_v4 = vld [vmem:[%s1095_s0 + $0x140] sm:$0x3] }
  0x38   :  { %564 = vmatmul.msk.f32.gmra.mxu3 %vm47_vm1, %v556_v37 }
  0x39   :  { %98 = vmatmul.f32.gmra.mxu0 %v39_v38  ;;  %612 = vmatpush.msra.mxu1 %v694_v7  ;;  %v596_v7 = vld [vmem:[%s1095_s0 + $0x198] sm:$0xff] }
  0x3a   :  { %210 = vmatmul.f32.gmra.mxu2 %v549_v39  ;;  %542 = vmatmul.msk.f32.gmra.mxu1 %vm47_vm1, %v46_v40 }
  0x3b   :  { %432 = vmatpush.msrb.mxu0 %v758_v16  ;;  %613 = vmatpush.msra.mxu1 %v706_v9  ;;  %v597_v9 = vld [vmem:[%s1095_s0 + $0x1a0] sm:$0xff] }
  0x3d   :  { %433 = vmatpush.msrb.mxu0 %v767_v17  ;;  %614 = vmatpush.msra.mxu1 %v715_v10  ;;  %v598_v10 = vld [vmem:[%s1095_s0 + $0x1a8] sm:$0xff] }
  0x3f   :  { %434 = vmatpush.msrb.mxu0 %v780_v19  ;;  %615 = vmatpush.msra.mxu1 %v725_v11 }
  0x40   :  { %580 = vmatmul.msk.f32.vlgmr.msrb.gmra.mxu3 %vm47_vm1, %v566_v41 }
  0x41   :  { %101 = vmatmul.f32.gmra.mxu0 %v41_v42  ;;  %616 = vmatpush.msra.mxu1 %v737_v13 }
  0x42   :  { %213 = vmatmul.f32.gmra.mxu2 %v551_v43  ;;  %320 = vmatmul.f32.vlgmr.msrb.gmra.mxu1 %v565_v44 }
  0x43   :  { %435 = vmatpush.msrb.mxu0 %v792_v21  ;;  %617 = vmatpush.msra.mxu1 %v749_v15 }
  0x45   :  { %436 = vmatpush.msrb.mxu0 %v801_v22  ;;  %618 = vmatpush.msra.mxu1 %v758_v16 }
  0x47   :  { %437 = vmatpush.msrb.mxu0 %v810_v23  ;;  %619 = vmatpush.msra.mxu1 %v767_v17 }
  0x48   :  { %581 = vmatmul.msk.f32.gmra.mxu3 %vm47_vm1, %v568_v45 }
  0x49   :  { %104 = vmatmul.f32.gmra.mxu0 %v43_v46  ;;  %620 = vmatpush.msra.mxu1 %v780_v19 }
  0x4a   :  { %216 = vmatmul.f32.gmra.mxu2 %v553_v47  ;;  %323 = vmatmul.f32.gmra.mxu1 %v567_v48 }
  0x4b   :  { %438 = vmatpush.msrb.mxu0 %v821_v25  ;;  %621 = vmatpush.msra.mxu1 %v792_v21 }
  0x4d   :  { %622 = vmatpush.msra.mxu1 %v801_v22 }
  0x4f   :  { %623 = vmatpush.msra.mxu1 %v810_v23 }
  0x50   :  { %582 = vmatmul.msk.f32.gmra.mxu3 %vm47_vm1, %v570_v49 }
  0x51   :  { %107 = vmatmul.f32.gmra.mxu0 %v45_v50  ;;  %624 = vmatpush.msra.mxu1 %v821_v25 }
  0x52   :  { %219 = vmatmul.f32.gmra.mxu2 %v555_v51  ;;  %326 = vmatmul.f32.gmra.mxu1 %v569_v52 }
  0x58   :  { %583 = vmatmul.msk.f32.gmra.mxu3 %vm47_vm1, %v572_v53 }
  0x59   :  { %439 = vmatmul.f32.vlgmr.msrb.gmra.mxu0 %v587_v54 }
  0x5a   :  { %602 = vmatmul.msk.f32.vlgmr.msrb.gmra.mxu2 %vm47_vm1, %v588_v55  ;;  %329 = vmatmul.f32.gmra.mxu1 %v571_v56 }
  0x60   :  { %584 = vmatmul.msk.f32.gmra.mxu3 %vm47_vm1, %v574_v57 }
  0x61   :  { %442 = vmatmul.f32.gmra.mxu0 %v589_v58 }
  0x62   :  { %603 = vmatmul.msk.f32.gmra.mxu2 %vm47_vm1, %v590_v59  ;;  %332 = vmatmul.f32.gmra.mxu1 %v573_v60 }
  0x68   :  { %585 = vmatmul.msk.f32.gmra.mxu3 %vm47_vm1, %v576_v61 }
  0x69   :  { %445 = vmatmul.f32.gmra.mxu0 %v591_v62 }
  0x6a   :  { %604 = vmatmul.msk.f32.gmra.mxu2 %vm47_vm1, %v592_v63  ;;  %335 = vmatmul.f32.gmra.mxu1 %v575_v0 }
  0x70   :  { %586 = vmatmul.msk.f32.gmra.mxu3 %vm47_vm1, %v578_v1 }
  0x71   :  { %448 = vmatmul.f32.gmra.mxu0 %v593_v2 }
  0x72   :  { %605 = vmatmul.msk.f32.gmra.mxu2 %vm47_vm1, %v594_v3  ;;  %338 = vmatmul.f32.gmra.mxu1 %v577_v4 }
  0x78   :  { %608 = vmatmul.msk.f32.vlgmr.msra.gmra.mxu3 %vm47_vm1, %v600_v5 }
  0x79   :  { %451 = vmatmul.f32.gmra.mxu0 %v595_v6  ;;  %v1057_v6 = vld [vmem:[%s1096_s2] ss:$0 sm:$0xff] }
  0x7a   :  { %606 = vmatmul.msk.f32.gmra.mxu2 %vm47_vm1, %v596_v7  ;;  %457 = vmatmul.f32.vlgmr.msra.gmra.mxu1 %v599_v8 }
  0x81   :  { %454 = vmatmul.f32.gmra.mxu0 %v597_v9 }
  0x82   :  { %607 = vmatmul.msk.f32.gmra.mxu2 %vm47_vm1, %v598_v10 }
  0x86   :  { %v128_v11 = vpop.f32.mrf.mxu1 }
  0x8b   :  { %v240_v12 = vpop.f32.mrf.mxu3 }
  0x8e   :  { %v131_v13 = vpop.f32.mrf.mxu1 }
  0x93   :  { %v243_v14 = vpop.f32.mrf.mxu3 }
  0x96   :  { %v134_v15 = vpop.f32.mrf.mxu1 }
  0x9b   :  { %v246_v16 = vpop.f32.mrf.mxu3 }
  0x9e   :  { %v90_v17 = vpop.f32.mrf.mxu0 }
  0x9f   :  { %v137_v18 = vpop.f32.mrf.mxu1  ;;  %v129_v21 = vadd.f32 %v128_v11, %v90_v17 }
  0xa3   :  { %v249_v19 = vpop.f32.mrf.mxu3 }
  0xa5   :  { %v202_v20 = vpop.f32.mrf.mxu2 }
  0xa6   :  { %v241_v22 = vadd.f32 %v240_v12, %v202_v20  ;;  %v93_v23 = vpop.f32.mrf.mxu0 }
  0xa7   :  { %v140_v24 = vpop.f32.mrf.mxu1  ;;  %v132_v28 = vadd.f32 %v131_v13, %v93_v23 }
  0xa8   :  { %v261_v25 = vmax.f32 %v129_v21, %v241_v22 }
  0xab   :  { %v252_v26 = vpop.f32.mrf.mxu3 }
  0xad   :  { %v205_v27 = vpop.f32.mrf.mxu2 }
  0xae   :  { %v244_v29 = vadd.f32 %v243_v14, %v205_v27  ;;  %v96_v30 = vpop.f32.mrf.mxu0 }
  0xaf   :  { %v143_v31 = vpop.f32.mrf.mxu1  ;;  %v135_v35 = vadd.f32 %v134_v15, %v96_v30 }
  0xb0   :  { %v262_v32 = vmax.f32 %v132_v28, %v244_v29 }
  0xb3   :  { %v255_v33 = vpop.f32.mrf.mxu3 }
  0xb5   :  { %v208_v34 = vpop.f32.mrf.mxu2 }
  0xb6   :  { %v247_v36 = vadd.f32 %v246_v16, %v208_v34  ;;  %v99_v37 = vpop.f32.mrf.mxu0 }
  0xb7   :  { %v1040_v38 = vpop.f32.mrf.mxu1  ;;  %v138_v42 = vadd.f32 %v137_v18, %v99_v37 }
  0xb8   :  { %v263_v39 = vmax.f32 %v135_v35, %v247_v36 }
  0xbb   :  { %v258_v40 = vpop.f32.mrf.mxu3 }
  0xbd   :  { %v211_v41 = vpop.f32.mrf.mxu2 }
  0xbe   :  { %v250_v43 = vadd.f32 %v249_v19, %v211_v41  ;;  %v102_v44 = vpop.f32.mrf.mxu0 }
  0xbf   :  { %v321_v45 = vpop.f32.mrf.mxu1  ;;  %v1042_v49 = vadd.f32 %v140_v24, %v102_v44 }
  0xc0   :  { %v264_v46 = vmax.f32 %v138_v42, %v250_v43 }
  0xc3   :  { %v359_v47 = vpop.f32.mrf.mxu3 }
  0xc4   :  { %v360_v1 = vadd.f32 %v359_v47, %v321_v45 }
  0xc5   :  { %v214_v48 = vpop.f32.mrf.mxu2 }
  0xc6   :  { %v1044_v50 = vadd.f32 %v252_v26, %v214_v48  ;;  %v105_v51 = vpop.f32.mrf.mxu0  ;;  %v380_v4 = vmax.f32 %v261_v25, %v360_v1 }
  0xc7   :  { %v324_v52 = vpop.f32.mrf.mxu1  ;;  %v1048_v56 = vadd.f32 %v143_v31, %v105_v51 }
  0xc8   :  { %v265_v53 = vmax.f32 %v1042_v49, %v1044_v50 }
  0xcb   :  { %v362_v54 = vpop.f32.mrf.mxu3 }
  0xcc   :  { %v363_v10 = vadd.f32 %v362_v54, %v324_v52 }
  0xcd   :  { %v217_v55 = vpop.f32.mrf.mxu2 }
  0xce   :  { %v1050_v57 = vadd.f32 %v255_v33, %v217_v55  ;;  %v108_v58 = vpop.f32.mrf.mxu0  ;;  %v381_v15 = vmax.f32 %v262_v32, %v363_v10 }
  0xcf   :  { %v327_v59 = vpop.f32.mrf.mxu1 }
  0xd0   :  { %v266_v60 = vmax.f32 %v1048_v56, %v1050_v57 }
  0xd3   :  { %v365_v61 = vpop.f32.mrf.mxu3 }
  0xd4   :  { %v366_v20 = vadd.f32 %v365_v61, %v327_v59 }
  0xd5   :  { %v220_v62 = vpop.f32.mrf.mxu2 }
  0xd6   :  { %v440_v63 = vpop.f32.mrf.mxu0  ;;  %v382_v25 = vmax.f32 %v263_v39, %v366_v20  ;;  %v259_v35 = vadd.f32 %v258_v40, %v220_v62  ;;  %v147_v39 = vadd.f32 %v1040_v38, %v108_v58 }
  0xd7   :  { %v330_v0 = vpop.f32.mrf.mxu1 }
  0xd8   :  { %v267_v45 = vmax.f32 %v147_v39, %v259_v35 }
  0xdb   :  { %v368_v2 = vpop.f32.mrf.mxu3 }
  0xdc   :  { %v369_v30 = vadd.f32 %v368_v2, %v330_v0 }
  0xdd   :  { %v478_v3 = vpop.f32.mrf.mxu2 }
  0xde   :  { %v479_v5 = vadd.f32 %v478_v3, %v440_v63  ;;  %v443_v7 = vpop.f32.mrf.mxu0  ;;  %v383_v36 = vmax.f32 %v264_v46, %v369_v30 }
  0xdf   :  { %v333_v8 = vpop.f32.mrf.mxu1 }
  0xe0   :  { %v499_v9 = vmax.f32 %v380_v4, %v479_v5 }
  0xe2   :  { %v510_v11 = vadd.f32 %v1057_v6, %v499_v9 }
  0xe3   :  { %v371_v12 = vpop.f32.mrf.mxu3 }
  0xe4   :  { %v517_v13 = vmax.f32 %v510_v11, 0.0  ;;  %v372_v47 = vadd.f32 %v371_v12, %v333_v8 }
  0xe5   :  { %v481_v14 = vpop.f32.mrf.mxu2 }
  0xe6   :  { %524 = vst [vmem:[%s1097_s3] sm:$0xff] %v517_v13  ;;  %v482_v16 = vadd.f32 %v481_v14, %v443_v7  ;;  %v446_v17 = vpop.f32.mrf.mxu0  ;;  %v384_v55 = vmax.f32 %v265_v53, %v372_v47 }
  0xe7   :  { %v336_v18 = vpop.f32.mrf.mxu1 }
  0xe8   :  { %v500_v19 = vmax.f32 %v381_v15, %v482_v16 }
  0xea   :  { %v511_v21 = vadd.f32 %v1057_v6, %v500_v19 }
  0xeb   :  { %v374_v22 = vpop.f32.mrf.mxu3 }
  0xec   :  { %v518_v23 = vmax.f32 %v511_v21, 0.0  ;;  %v375_v62 = vadd.f32 %v374_v22, %v336_v18 }
  0xed   :  { %v484_v24 = vpop.f32.mrf.mxu2 }
  0xee   :  { %525 = vst [vmem:[%s1097_s3 + $0x8] sm:$0xff] %v518_v23  ;;  %v485_v26 = vadd.f32 %v484_v24, %v446_v17  ;;  %v449_v28 = vpop.f32.mrf.mxu0  ;;  %v385_v53 = vmax.f32 %v266_v60, %v375_v62 }
  0xef   :  { %v339_v27 = vpop.f32.mrf.mxu1 }
  0xf0   :  { %v501_v29 = vmax.f32 %v382_v25, %v485_v26 }
  0xf2   :  { %v512_v31 = vadd.f32 %v1057_v6, %v501_v29 }
  0xf3   :  { %v377_v32 = vpop.f32.mrf.mxu3 }
  0xf4   :  { %v519_v33 = vmax.f32 %v512_v31, 0.0  ;;  %v378_v41 = vadd.f32 %v377_v32, %v339_v27 }
  0xf5   :  { %v487_v34 = vpop.f32.mrf.mxu2 }
  0xf6   :  { %526 = vst [vmem:[%s1097_s3 + $0x10] sm:$0xff] %v519_v33  ;;  %v488_v37 = vadd.f32 %v487_v34, %v449_v28  ;;  %v452_v44 = vpop.f32.mrf.mxu0  ;;  %v386_v52 = vmax.f32 %v267_v45, %v378_v41 }
  0xf7   :  { %v458_v43 = vpop.f32.mrf.mxu1 }
  0xf8   :  { %v502_v42 = vmax.f32 %v383_v36, %v488_v37 }
  0xfa   :  { %v513_v48 = vadd.f32 %v1057_v6, %v502_v42 }
  0xfb   :  { %v496_v51 = vpop.f32.mrf.mxu3 }
  0xfc   :  { %v520_v54 = vmax.f32 %v513_v48, 0.0  ;;  %v497_v40 = vadd.f32 %v496_v51, %v458_v43 }
  0xfd   :  { %v490_v46 = vpop.f32.mrf.mxu2 }
  0xfe   :  { %527 = vst [vmem:[%s1097_s3 + $0x18] sm:$0xff] %v520_v54  ;;  %v505_v38 = vmax.f32 %v386_v52, %v497_v40  ;;  %v491_v58 = vadd.f32 %v490_v46, %v452_v44  ;;  %v455_v1 = vpop.f32.mrf.mxu0 }
 0x100   :  { %v516_v59 = vadd.f32 %v1057_v6, %v505_v38  ;;  %v503_v61 = vmax.f32 %v384_v55, %v491_v58 }
 0x102   :  { %v523_v63 = vmax.f32 %v516_v59, 0.0  ;;  %v514_v0 = vadd.f32 %v1057_v6, %v503_v61 }
 0x104   :  { %530 = vst [vmem:[%s1097_s3 + $0x30] sm:$0x3] %v523_v63  ;;  %v521_v49 = vmax.f32 %v514_v0, 0.0 }
 0x105   :  { %v493_v50 = vpop.f32.mrf.mxu2 }
 0x106   :  { %528 = vst [vmem:[%s1097_s3 + $0x20] sm:$0xff] %v521_v49  ;;  %v494_v2 = vadd.f32 %v493_v50, %v455_v1 }
 0x108   :  { %v504_v3 = vmax.f32 %v385_v53, %v494_v2 }
 0x10a   :  { %v515_v4 = vadd.f32 %v1057_v6, %v504_v3 }
 0x10c   :  { %v522_v5 = vmax.f32 %v515_v4, 0.0 }
 0x10e   :  { %529 = vst [vmem:[%s1097_s3 + $0x28] sm:$0xff] %v522_v5 }

// kernel: lenet_forward_pallas.5
= control target key start
LH: loop header
LB: loop body
LE: loop exit
PB: predicated region body
PF: predicated region fallthrough
CT: control target
= control target key end

     0   :  { %vm84_vm0 = vcmask 130048   ;;  %s569_s1 = inlined_call_operand.vmem [shape: f32[400,128], index: 1, kind: input, shape index: {}]   ;;  %s570_s0 = inlined_call_operand.vmem [shape: f32[8,400], index: 0, kind: input, shape index: {}]   ;;  %s571_s3 = inlined_call_operand.vmem [shape: f32[128,128], index: 3, kind: input, shape index: {}]   ;;  %s572_s2 = inlined_call_operand.vmem [shape: f32[1,128], index: 2, kind: input, shape index: {}]   ;;  %s573_s4 = inlined_call_operand.vmem [shape: f32[1,128], index: 4, kind: input, shape index: {}]   ;;  %s574_s5 = inlined_call_operand.vmem [shape: f32[128,128], index: 5, kind: input, shape index: {}]   ;;  %s575_s6 = inlined_call_operand.vmem [shape: f32[1,128], index: 6, kind: input, shape index: {}]   ;;  %s576_s7 = inlined_call_operand.vmem [shape: f32[8,128], index: 7, kind: output, shape index: {}]  }
   0x1   :  { %v77_v0 = vld [vmem:[%s569_s1 + $0x178] sm:$0xff]  ;;  %v76_v2 = vld [vmem:[%s569_s1 + $0x170] sm:$0xff]  ;;  %v75_v5 = vld [vmem:[%s569_s1 + $0x168] sm:$0xff] }
   0x2   :  { %v45_v1 = vld [vmem:[%s569_s1 + $0x78] sm:$0xff]  ;;  %128 = vmatpush.msra.mxu2 %v77_v0  ;;  %v44_v3 = vld [vmem:[%s569_s1 + $0x70] sm:$0xff]  ;;  %v43_v6 = vld [vmem:[%s569_s1 + $0x68] sm:$0xff] }
   0x3   :  { %88 = vmatpush.msra.mxu0 %v45_v1  ;;  %v61_v4 = vld [vmem:[%s569_s1 + $0xf8] sm:$0xff]  ;;  %v60_v7 = vld [vmem:[%s569_s1 + $0xf0] sm:$0xff]  ;;  %v59_v8 = vld [vmem:[%s569_s1 + $0xe8] sm:$0xff] }
   0x4   :  { %108 = vmatpush.msra.mxu1 %v61_v4  ;;  %129 = vmatpush.msra.mxu2 %v76_v2  ;;  %v74_v9 = vld [vmem:[%s569_s1 + $0x160] sm:$0xff]  ;;  %v73_v12 = vld [vmem:[%s569_s1 + $0x158] sm:$0xff]  ;;  %v72_v15 = vld [vmem:[%s569_s1 + $0x150] sm:$0xff] }
   0x5   :  { %89 = vmatpush.msra.mxu0 %v44_v3  ;;  %v42_v10 = vld [vmem:[%s569_s1 + $0x60] sm:$0xff]  ;;  %v41_v13 = vld [vmem:[%s569_s1 + $0x58] sm:$0xff]  ;;  %v40_v16 = vld [vmem:[%s569_s1 + $0x50] sm:$0xff] }
   0x6   :  { %109 = vmatpush.msra.mxu1 %v60_v7  ;;  %130 = vmatpush.msra.mxu2 %v75_v5  ;;  %v58_v11 = vld [vmem:[%s569_s1 + $0xe0] sm:$0xff]  ;;  %v57_v14 = vld [vmem:[%s569_s1 + $0xd8] sm:$0xff]  ;;  %v56_v17 = vld [vmem:[%s569_s1 + $0xd0] sm:$0xff] }
   0x7   :  { %90 = vmatpush.msra.mxu0 %v43_v6  ;;  %v71_v18 = vld [vmem:[%s569_s1 + $0x148] sm:$0xff]  ;;  %v70_v21 = vld [vmem:[%s569_s1 + $0x140] sm:$0xff]  ;;  %v69_v24 = vld [vmem:[%s569_s1 + $0x138] sm:$0xff] }
   0x8   :  { %110 = vmatpush.msra.mxu1 %v59_v8  ;;  %131 = vmatpush.msra.mxu2 %v74_v9  ;;  %v39_v19 = vld [vmem:[%s569_s1 + $0x48] sm:$0xff]  ;;  %v38_v22 = vld [vmem:[%s569_s1 + $0x40] sm:$0xff]  ;;  %v37_v25 = vld [vmem:[%s569_s1 + $0x38] sm:$0xff] }
   0x9   :  { %91 = vmatpush.msra.mxu0 %v42_v10  ;;  %v55_v20 = vld [vmem:[%s569_s1 + $0xc8] sm:$0xff]  ;;  %v54_v23 = vld [vmem:[%s569_s1 + $0xc0] sm:$0xff]  ;;  %v53_v26 = vld [vmem:[%s569_s1 + $0xb8] sm:$0xff] }
   0xa   :  { %111 = vmatpush.msra.mxu1 %v58_v11  ;;  %132 = vmatpush.msra.mxu2 %v73_v12  ;;  %v79_v27 = vld [vmem:[%s569_s1 + $0x188] sm:$0xff]  ;;  %v68_v28 = vld [vmem:[%s569_s1 + $0x130] sm:$0xff]  ;;  %v78_v30 = vld [vmem:[%s569_s1 + $0x180] sm:$0xff] }
   0xb   :  { %92 = vmatpush.msra.mxu0 %v41_v13  ;;  %v36_v29 = vld [vmem:[%s569_s1 + $0x30] sm:$0xff]  ;;  %162 = vmatpush.msra.mxu3 %v79_v27  ;;  %v29_v32 = vld [vmem:[%s570_s0 + $0x18] sm:$0xff]  ;;  %v67_v33 = vld [vmem:[%s569_s1 + $0x128] sm:$0xff] }
   0xc   :  { %112 = vmatpush.msra.mxu1 %v57_v14  ;;  %133 = vmatpush.msra.mxu2 %v72_v15  ;;  %v52_v31 = vld [vmem:[%s569_s1 + $0xb0] sm:$0xff]  ;;  %v35_v34 = vld [vmem:[%s569_s1 + $0x28] sm:$0xff]  ;;  %v184_v36 = vld [vmem:[%s571_s3 + $0x78] sm:$0xff] }
   0xd   :  { %93 = vmatpush.msra.mxu0 %v40_v16  ;;  %163 = vmatpush.msra.mxu3 %v78_v30  ;;  %v51_v35 = vld [vmem:[%s569_s1 + $0xa8] sm:$0xff]  ;;  %v66_v37 = vld [vmem:[%s569_s1 + $0x120] sm:$0xff]  ;;  %v183_v40 = vld [vmem:[%s571_s3 + $0x70] sm:$0xff] }
   0xe   :  { %113 = vmatpush.msra.mxu1 %v56_v17  ;;  %134 = vmatpush.msra.mxu2 %v71_v18  ;;  %v34_v38 = vld [vmem:[%s569_s1 + $0x20] sm:$0xff]  ;;  %v65_v41 = vld [vmem:[%s569_s1 + $0x118] sm:$0xff]  ;;  %v182_v44 = vld [vmem:[%s571_s3 + $0x68] sm:$0xff] }
   0xf   :  { %94 = vmatpush.msra.mxu0 %v39_v19  ;;  %255 = vmatmul.msk.f32.vlgmr.msra.gmra.mxu3 %vm84_vm0, %v29_v32  ;;  %v50_v39 = vld [vmem:[%s569_s1 + $0xa0] sm:$0xff]  ;;  %v33_v42 = vld [vmem:[%s569_s1 + $0x18] sm:$0xff]  ;;  %v64_v45 = vld [vmem:[%s569_s1 + $0x110] sm:$0xff] }
  0x10   :  { %114 = vmatpush.msra.mxu1 %v55_v20  ;;  %135 = vmatpush.msra.mxu2 %v70_v21  ;;  %v49_v43 = vld [vmem:[%s569_s1 + $0x98] sm:$0xff]  ;;  %v32_v46 = vld [vmem:[%s569_s1 + $0x10] sm:$0xff]  ;;  %v181_v48 = vld [vmem:[%s571_s3 + $0x60] sm:$0xff] }
  0x11   :  { %95 = vmatpush.msra.mxu0 %v38_v22  ;;  %189 = vmatpush.msrb.mxu3 %v184_v36  ;;  %v48_v47 = vld [vmem:[%s569_s1 + $0x90] sm:$0xff]  ;;  %v63_v49 = vld [vmem:[%s569_s1 + $0x108] sm:$0xff]  ;;  %v180_v52 = vld [vmem:[%s571_s3 + $0x58] sm:$0xff] }
  0x12   :  { %115 = vmatpush.msra.mxu1 %v54_v23  ;;  %136 = vmatpush.msra.mxu2 %v69_v24  ;;  %v31_v50 = vld [vmem:[%s569_s1 + $0x8] sm:$0xff]  ;;  %v62_v53 = vld [vmem:[%s569_s1 + $0x100] sm:$0xff]  ;;  %v28_v55 = vld [vmem:[%s570_s0 + $0x10] sm:$0xff] }
  0x13   :  { %96 = vmatpush.msra.mxu0 %v37_v25  ;;  %190 = vmatpush.msrb.mxu3 %v183_v40  ;;  %v47_v51 = vld [vmem:[%s569_s1 + $0x88] sm:$0xff]  ;;  %v30_v54 = vld [vmem:[%s569_s1] sm:$0xff]  ;;  %v179_v58 = vld [vmem:[%s571_s3 + $0x50] sm:$0xff] }
  0x14   :  { %116 = vmatpush.msra.mxu1 %v53_v26  ;;  %137 = vmatpush.msra.mxu2 %v68_v28  ;;  %v26_v56 = vld [vmem:[%s570_s0] sm:$0xff]  ;;  %v27_v59 = vld [vmem:[%s570_s0 + $0x8] sm:$0xff]  ;;  %v176_v62 = vld [vmem:[%s571_s3 + $0x38] sm:$0xff] }
  0x15   :  { %97 = vmatpush.msra.mxu0 %v36_v29  ;;  %191 = vmatpush.msrb.mxu3 %v182_v44  ;;  %v46_v57 = vld [vmem:[%s569_s1 + $0x80] sm:$0xff]  ;;  %v178_v60 = vld [vmem:[%s571_s3 + $0x48] sm:$0xff]  ;;  %v175_v63 = vld [vmem:[%s571_s3 + $0x30] sm:$0xff] }
  0x16   :  { %117 = vmatpush.msra.mxu1 %v52_v31  ;;  %138 = vmatpush.msra.mxu2 %v67_v33  ;;  %v177_v61 = vld [vmem:[%s571_s3 + $0x40] sm:$0xff]  ;;  %v174_v0 = vld [vmem:[%s571_s3 + $0x28] sm:$0xff]  ;;  %v172_v2 = vld [vmem:[%s571_s3 + $0x18] sm:$0xff] }
  0x17   :  { %98 = vmatpush.msra.mxu0 %v35_v34  ;;  %192 = vmatpush.msrb.mxu3 %v181_v48  ;;  %v173_v1 = vld [vmem:[%s571_s3 + $0x20] sm:$0xff]  ;;  %v171_v3 = vld [vmem:[%s571_s3 + $0x10] sm:$0xff]  ;;  %v170_v4 = vld [vmem:[%s571_s3 + $0x8] sm:$0xff] }
  0x18   :  { %118 = vmatpush.msra.mxu1 %v51_v35  ;;  %139 = vmatpush.msra.mxu2 %v66_v37  ;;  %v169_v5 = vld [vmem:[%s571_s3] sm:$0xff]  ;;  %v225_v6 = vld [vmem:[%s574_s5 + $0x78] sm:$0xff]  ;;  %v224_v7 = vld [vmem:[%s574_s5 + $0x70] sm:$0xff] }
  0x19   :  { %99 = vmatpush.msra.mxu0 %v34_v38  ;;  %193 = vmatpush.msrb.mxu3 %v180_v52  ;;  %v223_v8 = vld [vmem:[%s574_s5 + $0x68] sm:$0xff]  ;;  %v222_v9 = vld [vmem:[%s574_s5 + $0x60] sm:$0xff]  ;;  %v221_v10 = vld [vmem:[%s574_s5 + $0x58] sm:$0xff] }
  0x1a   :  { %119 = vmatpush.msra.mxu1 %v50_v39  ;;  %140 = vmatpush.msra.mxu2 %v65_v41  ;;  %v220_v11 = vld [vmem:[%s574_s5 + $0x50] sm:$0xff]  ;;  %v219_v12 = vld [vmem:[%s574_s5 + $0x48] sm:$0xff]  ;;  %v218_v13 = vld [vmem:[%s574_s5 + $0x40] sm:$0xff] }
  0x1b   :  { %100 = vmatpush.msra.mxu0 %v33_v42  ;;  %194 = vmatpush.msrb.mxu3 %v179_v58  ;;  %v217_v14 = vld [vmem:[%s574_s5 + $0x38] sm:$0xff]  ;;  %v256_v15 = vld [vmem:[%s572_s2] ss:$0 sm:$0xff]  ;;  %v216_v16 = vld [vmem:[%s574_s5 + $0x30] sm:$0xff] }
  0x1c   :  { %120 = vmatpush.msra.mxu1 %v49_v43  ;;  %141 = vmatpush.msra.mxu2 %v64_v45  ;;  %v215_v17 = vld [vmem:[%s574_s5 + $0x28] sm:$0xff]  ;;  %v214_v20 = vld [vmem:[%s574_s5 + $0x20] sm:$0xff]  ;;  %v213_v23 = vld [vmem:[%s574_s5 + $0x18] sm:$0xff] }
  0x1d   :  { %101 = vmatpush.msra.mxu0 %v32_v46  ;;  %195 = vmatpush.msrb.mxu3 %v178_v60  ;;  %v212_v29 = vld [vmem:[%s574_s5 + $0x10] sm:$0xff]  ;;  %v211_v30 = vld [vmem:[%s574_s5 + $0x8] sm:$0xff]  ;;  %v210_v31 = vld [vmem:[%s574_s5] sm:$0xff] }
  0x1e   :  { %121 = vmatpush.msra.mxu1 %v48_v47  ;;  %142 = vmatpush.msra.mxu2 %v63_v49  ;;  %v257_v32 = vld [vmem:[%s573_s4] ss:$0 sm:$0xff] }
  0x1f   :  { %102 = vmatpush.msra.mxu0 %v31_v50  ;;  %196 = vmatpush.msrb.mxu3 %v177_v61  ;;  %v258_v36 = vld [vmem:[%s575_s6] ss:$0 sm:$0xff] }
  0x20   :  { %122 = vmatpush.msra.mxu1 %v47_v51  ;;  %143 = vmatpush.msra.mxu2 %v62_v53 }
  0x21   :  { %103 = vmatpush.msra.mxu0 %v30_v54  ;;  %144 = vmatmul.f32.vlgmr.msra.gmra.mxu2 %v28_v55 }
  0x22   :  { %104 = vmatmul.f32.vlgmr.msra.gmra.mxu0 %v26_v56  ;;  %123 = vmatpush.msra.mxu1 %v46_v57 }
  0x23   :  { %124 = vmatmul.f32.vlgmr.msra.gmra.mxu1 %v27_v59  ;;  %197 = vmatpush.msrb.mxu3 %v176_v62 }
  0x24   :  { %230 = vmatpush.msrb.mxu0 %v225_v6 }
  0x25   :  { %198 = vmatpush.msrb.mxu3 %v175_v63 }
  0x26   :  { %231 = vmatpush.msrb.mxu0 %v224_v7 }
  0x27   :  { %199 = vmatpush.msrb.mxu3 %v174_v0 }
  0x28   :  { %232 = vmatpush.msrb.mxu0 %v223_v8 }
  0x29   :  { %200 = vmatpush.msrb.mxu3 %v173_v1 }
  0x2a   :  { %233 = vmatpush.msrb.mxu0 %v222_v9 }
  0x2b   :  { %201 = vmatpush.msrb.mxu3 %v172_v2 }
  0x2c   :  { %234 = vmatpush.msrb.mxu0 %v221_v10 }
  0x2d   :  { %202 = vmatpush.msrb.mxu3 %v171_v3 }
  0x2e   :  { %235 = vmatpush.msrb.mxu0 %v220_v11 }
  0x2f   :  { %203 = vmatpush.msrb.mxu3 %v170_v4 }
  0x30   :  { %236 = vmatpush.msrb.mxu0 %v219_v12 }
  0x31   :  { %204 = vmatpush.msrb.mxu3 %v169_v5 }
  0x32   :  { %237 = vmatpush.msrb.mxu0 %v218_v13 }
  0x34   :  { %238 = vmatpush.msrb.mxu0 %v217_v14 }
  0x36   :  { %239 = vmatpush.msrb.mxu0 %v216_v16 }
  0x38   :  { %240 = vmatpush.msrb.mxu0 %v215_v17 }
  0x3a   :  { %241 = vmatpush.msrb.mxu0 %v214_v20 }
  0x3c   :  { %242 = vmatpush.msrb.mxu0 %v213_v23 }
  0x3e   :  { %243 = vmatpush.msrb.mxu0 %v212_v29 }
  0x40   :  { %244 = vmatpush.msrb.mxu0 %v211_v30 }
  0x42   :  { %245 = vmatpush.msrb.mxu0 %v210_v31 }
  0x92   :  { %v165_v25 = vpop.f32.mrf.mxu3 }
  0x9f   :  { %v105_v18 = vpop.f32.mrf.mxu0 }
  0xa0   :  { %v106_v19 = vadd.f32 %v256_v15, %v105_v18  ;;  %v125_v21 = vpop.f32.mrf.mxu1 }
  0xa2   :  { %v126_v22 = vadd.f32 %v125_v21, %v106_v19 }
  0xa4   :  { %v145_v24 = vpop.f32.mrf.mxu2 }
  0xa5   :  { %v146_v26 = vadd.f32 %v145_v24, %v126_v22 }
  0xa7   :  { %v166_v27 = vadd.f32 %v165_v25, %v146_v26 }
  0xa9   :  { %v168_v28 = vmax.f32 %v166_v27, 0.0 }
  0xab   :  { %205 = vmatmul.f32.vlgmr.msrb.gmra.mxu3 %v168_v28 }
 0x12e   :  { %v206_v33 = vpop.f32.mrf.mxu3 }
 0x12f   :  { %v207_v34 = vadd.f32 %v257_v32, %v206_v33 }
 0x131   :  { %v209_v35 = vmax.f32 %v207_v34, 0.0 }
 0x133   :  { %246 = vmatmul.f32.vlgmr.msrb.gmra.mxu0 %v209_v35 }
 0x1b0   :  { %v247_v37 = vpop.f32.mrf.mxu0 }
 0x1b1   :  { %v248_v38 = vadd.f32 %v258_v36, %v247_v37 }
 0x1b3   :  { %250 = vst [vmem:[%s576_s7] sm:$0xff] %v248_v38 }

</bundles_post_ra>
